<compile_context>
chip_gen: v5e
topology: v5e:2x2
jax: 0.10.0
libtpu: 0.0.40
codegen_flags: <defaults>
</compile_context>

<pallas_src>
import functools

import jax
import jax.numpy as jnp
from jax.experimental import pallas as pl

LANES = 128  # lane width of the packed head output slab / parameter slab


def _softplus(x):
    # numerically stable softplus, matches torch.nn.functional.softplus
    return jnp.maximum(x, 0.0) + jnp.log1p(jnp.exp(-jnp.abs(x)))


def _round_up(n, m=8):
    return ((n + m - 1) // m) * m


def _slab_layout(I, H, DH):
    """Row offsets of each parameter inside the packed (rows, 128) f32 slab.
    Every section starts on an 8-row (sublane-aligned) boundary."""
    r_wout = 0
    r_bout = _round_up(r_wout + DH)
    r_wih = _round_up(r_bout + 1)
    r_whh = _round_up(r_wih + I)
    r_brnn = _round_up(r_whh + H)
    r_w1 = _round_up(r_brnn + 1)
    r_b1 = _round_up(r_w1 + H)
    rows = _round_up(r_b1 + 1)
    return dict(r_wout=r_wout, r_bout=r_bout, r_wih=r_wih, r_whh=r_whh,
                r_brnn=r_brnn, r_w1=r_w1, r_b1=r_b1, rows=rows)


def pack_params(w_ih, w_hh, b_ih, b_hh, w_fc, b_fc, w_mean, b_mean, w_vars, b_vars):
    """One-time parameter prep (PyTorch layouts in, single lane-dense f32 slab out).
    Doing this once (not per forward call) removes the per-call scatter ops and cuts the
    kernel's prologue DMAs from 10 tiny transfers to one 64 KiB transfer."""
    H, I = w_ih.shape
    DH = w_fc.shape[0]
    O = w_mean.shape[0]
    lay = _slab_layout(I, H, DH)
    slab = jnp.zeros((lay["rows"], LANES), jnp.float32)
    # packed output projection: cols [0:O) = fc_mean, [O:2O) = fc_vars, rest 0-pad
    slab = slab.at[lay["r_wout"]:lay["r_wout"] + DH, 0:O].set(w_mean.T)
    slab = slab.at[lay["r_wout"]:lay["r_wout"] + DH, O:2 * O].set(w_vars.T)
    slab = slab.at[lay["r_bout"], 0:O].set(b_mean)
    slab = slab.at[lay["r_bout"], O:2 * O].set(b_vars)
    # RNN cell + fc (stored transposed for right-multiplication inside the kernel)
    slab = slab.at[lay["r_wih"]:lay["r_wih"] + I, 0:H].set(w_ih.T)
    slab = slab.at[lay["r_whh"]:lay["r_whh"] + H, 0:H].set(w_hh.T)
    slab = slab.at[lay["r_brnn"], 0:H].set(b_ih + b_hh)
    slab = slab.at[lay["r_w1"]:lay["r_w1"] + H, 0:DH].set(w_fc.T)
    slab = slab.at[lay["r_b1"], 0:DH].set(b_fc)
    return slab.astype(jnp.float32)


# ---------------------------------------------------------------------------
# Fused kernel.
#   x_ref    : (B*T, I)   batch-major flattened input (row = b*T + t)
#   h0a_ref  : (B, H)     first  init_h0 draw (last layer)  -> t=0 mu path
#   h0b_ref  : (B, H)     second init_h0 draw (last layer)  -> t=0 vars path
#   p_ref    : (rows,128) packed parameter slab (see pack_params)
#   out_ref  : (B*T, 128) time-shifted, batch-major result:
#              row b*T+t, cols [0:O)=mu[b,t], cols [O:2O)=vars[b,t]
# ---------------------------------------------------------------------------
def _fused_rnn_kernel(x_ref, h0a_ref, h0b_ref, p_ref, out_ref, *,
                      B, T, I, H, DH, O,
                      r_wout, r_bout, r_wih, r_whh, r_brnn, r_w1, r_b1):
    f32 = jnp.float32

    # ---- unpack the parameter slab (sublane-aligned static sub-block loads) ----
    wout = p_ref[r_wout:r_wout + DH, :]        # (DH, 128) = [W_mean^T | W_vars^T | 0]
    bout = p_ref[r_bout:r_bout + 1, :]         # (1, 128)  = [b_mean   | b_vars   | 0]
    wih = p_ref[r_wih:r_wih + I, 0:H]          # (I, H)   W_ih^T
    whh = p_ref[r_whh:r_whh + H, 0:H]          # (H, H)   W_hh^T
    brnn = p_ref[r_brnn:r_brnn + 1, 0:H]       # (1, H)   b_ih + b_hh
    w1 = p_ref[r_w1:r_w1 + H, 0:DH]            # (H, DH)  fc.weight^T
    b1 = p_ref[r_b1:r_b1 + 1, 0:DH]            # (1, DH)  fc.bias

    is_mu = jax.lax.broadcasted_iota(jnp.int32, (B, LANES), 1) < O

    def head(hidden):
        """(B,H) hidden -> (B,128): cols [0:O)=fc_mean(y), [O:2O)=softplus(fc_vars(y))
        with y = softplus(fc(hidden)). Pad lanes carry softplus(0) and are sliced off
        by the wrapper."""
        y = _softplus(jnp.dot(hidden, w1, preferred_element_type=f32) + b1)
        lin = jnp.dot(y, wout, preferred_element_type=f32) + bout
        return jnp.where(is_mu, lin, _softplus(lin))

    # ---- t = 0 rows: mu from the first init_h0 draw, vars from the second ----
    row0 = jnp.where(is_mu, head(h0a_ref[...]), head(h0b_ref[...]))      # (B, 128)
    for b in range(B):
        out_ref[b * T:b * T + 1, :] = row0[b:b + 1, :]

    if T > 1:
        # ---- hoisted input projection: one matmul for all rows (batch-major) ----
        xp_bm = jnp.dot(x_ref[...], wih, preferred_element_type=f32)    # (B*T, H)

        # Regroup batch-major -> time-major with a 0/1 selection matmul so each
        # timestep sees a contiguous (B, H) block; the MXU does the data movement
        # (no gathers/scatters, everything stays register resident).
        #   sel[t*B + b, b*T + t] = 1    for t in [0, T-1)  (last step is discarded)
        n_tm = (T - 1) * B
        r = jax.lax.broadcasted_iota(jnp.int32, (n_tm, B * T), 0)
        c = jax.lax.broadcasted_iota(jnp.int32, (n_tm, B * T), 1)
        terms = []
        for t in range(T - 1):
            in_blk = (r >= t * B) & (r < (t + 1) * B)
            terms.append(in_blk & (c == (r - t * B) * T + t))
        sel = jnp.where(functools.reduce(jnp.logical_or, terms), 1.0, 0.0)
        xp = jnp.dot(sel, xp_bm, preferred_element_type=f32) + brnn     # (n_tm, H)

        # ---- tanh recurrence, batched over B; hidden state lives in registers ----
        h = jnp.tanh(xp[0:B, :])            # h_{-1} = 0  =>  first W_hh matmul skipped
        hd = head(h)                        # head work never feeds back into the chain
        for b in range(B):
            out_ref[b * T + 1:b * T + 2, :] = hd[b:b + 1, :]
        for t in range(1, T - 1):
            h = jnp.tanh(xp[t * B:(t + 1) * B, :]
                         + jnp.dot(h, whh, preferred_element_type=f32))
            hd = head(h)
            for b in range(B):
                out_ref[b * T + t + 1:b * T + t + 2, :] = hd[b:b + 1, :]


# ---------------------------------------------------------------------------
# Full RNN_model.forward
# ---------------------------------------------------------------------------
def rnn_model_forward(x, param_slab, h0_a_last, h0_b_last, *, H, DH, O):
    """x: (B, T, I) batch-first (PyTorch batch_first=True).  Returns (mu, vars)."""
    B, T, I = x.shape
    offs = {k: v for k, v in _slab_layout(I, H, DH).items() if k != "rows"}
    x2d = x.reshape(B * T, I)          # free reshape, no transpose / no copy

    slab = pl.pallas_call(
        functools.partial(_fused_rnn_kernel,
                          B=B, T=T, I=I, H=H, DH=DH, O=O, **offs),
        out_shape=jax.ShapeDtypeStruct((B * T, LANES), jnp.float32),
    )(x2d, h0_a_last, h0_b_last, param_slab)

    # Kernel output is already time-shifted and batch-major: just lane-slice + reshape.
    mu = slab[:, :O].reshape(B, T, O)
    vars_ = slab[:, O:2 * O].reshape(B, T, O)
    return mu, vars_


# pure-JAX reference of the PyTorch forward (for correctness validation only)
def _reference_forward(x, w_ih, w_hh, b_ih, b_hh, w_fc, b_fc,
                       w_mean, b_mean, w_vars, b_vars, h0a, h0b):
    B, T, _ = x.shape
    H = w_hh.shape[0]
    sp = lambda v: jnp.logaddexp(v, 0.0)
    h = jnp.zeros((B, H), jnp.float32)
    hs = []
    for t in range(T):
        h = jnp.tanh(x[:, t, :] @ w_ih.T + b_ih + h @ w_hh.T + b_hh)
        hs.append(h)
    r_out = jnp.stack(hs, axis=1)                      # (B, T, H)
    y = sp(r_out @ w_fc.T + b_fc)
    mu_seq = y @ w_mean.T + b_mean
    var_seq = sp(y @ w_vars.T + b_vars)
    mu_1 = (sp(h0a @ w_fc.T + b_fc) @ w_mean.T + b_mean)[:, None, :]
    var_1 = sp(sp(h0b @ w_fc.T + b_fc) @ w_vars.T + b_vars)[:, None, :]
    mu = jnp.concatenate([mu_1, mu_seq[:, :-1, :]], axis=1)
    vars_ = jnp.concatenate([var_1, var_seq[:, :-1, :]], axis=1)
    return mu, vars_


if __name__ == "__main__":
    # small shapes consistent with the module
    B, T = 2, 8                 # batch, sequence length
    I = 4                       # input_size
    H = 32                      # n_hidden
    DH = 32                     # n_hidden_dense
    O = 4                       # output_size

    key = jax.random.PRNGKey(0)
    keys = jax.random.split(key, 12)

    # deterministic parameter init (uniform, like PyTorch's default scaled init)
    s_rnn = 1.0 / jnp.sqrt(H)
    w_ih = jax.random.uniform(keys[0], (H, I), minval=-s_rnn, maxval=s_rnn)
    w_hh = jax.random.uniform(keys[1], (H, H), minval=-s_rnn, maxval=s_rnn)
    b_ih = jax.random.uniform(keys[2], (H,), minval=-s_rnn, maxval=s_rnn)
    b_hh = jax.random.uniform(keys[3], (H,), minval=-s_rnn, maxval=s_rnn)

    s_fc = 1.0 / jnp.sqrt(H)
    w_fc = jax.random.uniform(keys[4], (DH, H), minval=-s_fc, maxval=s_fc)
    b_fc = jax.random.uniform(keys[5], (DH,), minval=-s_fc, maxval=s_fc)
    s_o = 1.0 / jnp.sqrt(DH)
    w_mean = jax.random.uniform(keys[6], (O, DH), minval=-s_o, maxval=s_o)
    b_mean = jax.random.uniform(keys[7], (O,), minval=-s_o, maxval=s_o)
    w_vars = jax.random.uniform(keys[8], (O, DH), minval=-s_o, maxval=s_o)
    b_vars = jax.random.uniform(keys[9], (O,), minval=-s_o, maxval=s_o)

    # one-time parameter packing (outside the per-call forward path)
    param_slab = pack_params(w_ih, w_hh, b_ih, b_hh, w_fc, b_fc,
                             w_mean, b_mean, w_vars, b_vars)

    # example input (B, T, I), batch_first
    x = jax.random.normal(keys[10], (B, T, I), dtype=jnp.float32)

    # init_h0 is called twice in forward() -> two independent randn(n_layers, B, H)
    # draws; only the last-layer slice of each is consumed.
    h0_keys = jax.random.split(keys[11], 2)
    h0_a_last = jax.random.normal(h0_keys[0], (B, H), dtype=jnp.float32)
    h0_b_last = jax.random.normal(h0_keys[1], (B, H), dtype=jnp.float32)

    fwd = jax.jit(functools.partial(rnn_model_forward, H=H, DH=DH, O=O))
    mu, vars_ = fwd(x, param_slab, h0_a_last, h0_b_last)
    jax.block_until_ready((mu, vars_))

    # validate against the pure-JAX reference of the PyTorch forward
    mu_ref, vars_ref = _reference_forward(
        x, w_ih, w_hh, b_ih, b_hh, w_fc, b_fc,
        w_mean, b_mean, w_vars, b_vars, h0_a_last, h0_b_last)

    assert mu.shape == (B, T, O) and vars_.shape == (B, T, O)
    assert bool(jnp.all(jnp.isfinite(mu))) and bool(jnp.all(jnp.isfinite(vars_)))
    assert bool(jnp.all(vars_ >= 0.0))           # softplus output is non-negative
    assert bool(jnp.allclose(mu, mu_ref, atol=1e-4, rtol=1e-4))
    assert bool(jnp.allclose(vars_, vars_ref, atol=1e-4, rtol=1e-4))

    print("KERNEL_OK")
</pallas_src>

<mosaic_0001>
module attributes {stable_mosaic.version = 11 : i64} {
  func.func @_fused_rnn_kernel(%arg0: memref<16x4xf32, #tpu.memory_space<vmem>>, %arg1: memref<2x32xf32, #tpu.memory_space<vmem>>, %arg2: memref<2x32xf32, #tpu.memory_space<vmem>>, %arg3: memref<128x128xf32, #tpu.memory_space<vmem>>, %arg4: memref<16x128xf32, #tpu.memory_space<vmem>>) attributes {dimension_semantics = [], scalar_prefetch = 0 : i64, scratch_operands = 0 : i64, tpu.core_type = #tpu.core_type<tc>} {
    %c0 = arith.constant 0 : index
    %c0_0 = arith.constant 0 : index
    %0 = vector.load %arg3[%c0, %c0_0] : memref<128x128xf32, #tpu.memory_space<vmem>>, vector<32x128xf32>
    %c32 = arith.constant 32 : index
    %c0_1 = arith.constant 0 : index
    %1 = vector.load %arg3[%c32, %c0_1] : memref<128x128xf32, #tpu.memory_space<vmem>>, vector<1x128xf32>
    %c40 = arith.constant 40 : index
    %c0_2 = arith.constant 0 : index
    %2 = vector.load %arg3[%c40, %c0_2] : memref<128x128xf32, #tpu.memory_space<vmem>>, vector<4x32xf32>
    %c48 = arith.constant 48 : index
    %c0_3 = arith.constant 0 : index
    %3 = vector.load %arg3[%c48, %c0_3] : memref<128x128xf32, #tpu.memory_space<vmem>>, vector<32x32xf32>
    %c80 = arith.constant 80 : index
    %c0_4 = arith.constant 0 : index
    %4 = vector.load %arg3[%c80, %c0_4] : memref<128x128xf32, #tpu.memory_space<vmem>>, vector<1x32xf32>
    %c88 = arith.constant 88 : index
    %c0_5 = arith.constant 0 : index
    %5 = vector.load %arg3[%c88, %c0_5] : memref<128x128xf32, #tpu.memory_space<vmem>>, vector<32x32xf32>
    %c120 = arith.constant 120 : index
    %c0_6 = arith.constant 0 : index
    %6 = vector.load %arg3[%c120, %c0_6] : memref<128x128xf32, #tpu.memory_space<vmem>>, vector<1x32xf32>
    %7 = tpu.iota {dimensions = array<i32: 1>} : vector<2x128xi32>
    %c4_i32 = arith.constant 4 : i32
    %8 = vector.broadcast %c4_i32 : i32 to vector<2x128xi32>
    %9 = arith.cmpi slt, %7, %8 : vector<2x128xi32>
    %c0_7 = arith.constant 0 : index
    %c0_8 = arith.constant 0 : index
    %10 = vector.load %arg1[%c0_7, %c0_8] : memref<2x32xf32, #tpu.memory_space<vmem>>, vector<2x32xf32>
    %cst = arith.constant dense<0.000000e+00> : vector<2x32xf32>
    %11 = tpu.matmul %10, %5, %cst {dimension_numbers = #tpu.dot_dimension_numbers<[1], [0], [0], [1], [0, 0, 1, 1], [], []>} : vector<2x32xf32>, vector<32x32xf32>, vector<2x32xf32> -> vector<2x32xf32>
    %12 = vector.broadcast %6 : vector<1x32xf32> to vector<2x32xf32>
    %13 = arith.addf %11, %12 : vector<2x32xf32>
    %cst_9 = arith.constant 0.000000e+00 : f32
    %14 = vector.broadcast %cst_9 : f32 to vector<2x32xf32>
    %15 = arith.maximumf %13, %14 : vector<2x32xf32>
    %16 = math.absf %13 : vector<2x32xf32>
    %cst_10 = arith.constant 0.000000e+00 : f32
    %17 = vector.broadcast %cst_10 : f32 to vector<2x32xf32>
    %18 = arith.subf %17, %16 : vector<2x32xf32>
    %19 = math.exp %18 : vector<2x32xf32>
    %20 = math.log1p %19 : vector<2x32xf32>
    %21 = arith.addf %15, %20 : vector<2x32xf32>
    %cst_11 = arith.constant dense<0.000000e+00> : vector<2x128xf32>
    %22 = tpu.matmul %21, %0, %cst_11 {dimension_numbers = #tpu.dot_dimension_numbers<[1], [0], [0], [1], [0, 0, 1, 1], [], []>} : vector<2x32xf32>, vector<32x128xf32>, vector<2x128xf32> -> vector<2x128xf32>
    %23 = vector.broadcast %1 : vector<1x128xf32> to vector<2x128xf32>
    %24 = arith.addf %22, %23 : vector<2x128xf32>
    %cst_12 = arith.constant 0.000000e+00 : f32
    %25 = vector.broadcast %cst_12 : f32 to vector<2x128xf32>
    %26 = arith.maximumf %24, %25 : vector<2x128xf32>
    %27 = math.absf %24 : vector<2x128xf32>
    %cst_13 = arith.constant 0.000000e+00 : f32
    %28 = vector.broadcast %cst_13 : f32 to vector<2x128xf32>
    %29 = arith.subf %28, %27 : vector<2x128xf32>
    %30 = math.exp %29 : vector<2x128xf32>
    %31 = math.log1p %30 : vector<2x128xf32>
    %32 = arith.addf %26, %31 : vector<2x128xf32>
    %33 = arith.select %9, %24, %32 : vector<2x128xi1>, vector<2x128xf32>
    %c0_14 = arith.constant 0 : index
    %c0_15 = arith.constant 0 : index
    %34 = vector.load %arg2[%c0_14, %c0_15] : memref<2x32xf32, #tpu.memory_space<vmem>>, vector<2x32xf32>
    %cst_16 = arith.constant dense<0.000000e+00> : vector<2x32xf32>
    %35 = tpu.matmul %34, %5, %cst_16 {dimension_numbers = #tpu.dot_dimension_numbers<[1], [0], [0], [1], [0, 0, 1, 1], [], []>} : vector<2x32xf32>, vector<32x32xf32>, vector<2x32xf32> -> vector<2x32xf32>
    %36 = vector.broadcast %6 : vector<1x32xf32> to vector<2x32xf32>
    %37 = arith.addf %35, %36 : vector<2x32xf32>
    %cst_17 = arith.constant 0.000000e+00 : f32
    %38 = vector.broadcast %cst_17 : f32 to vector<2x32xf32>
    %39 = arith.maximumf %37, %38 : vector<2x32xf32>
    %40 = math.absf %37 : vector<2x32xf32>
    %cst_18 = arith.constant 0.000000e+00 : f32
    %41 = vector.broadcast %cst_18 : f32 to vector<2x32xf32>
    %42 = arith.subf %41, %40 : vector<2x32xf32>
    %43 = math.exp %42 : vector<2x32xf32>
    %44 = math.log1p %43 : vector<2x32xf32>
    %45 = arith.addf %39, %44 : vector<2x32xf32>
    %cst_19 = arith.constant dense<0.000000e+00> : vector<2x128xf32>
    %46 = tpu.matmul %45, %0, %cst_19 {dimension_numbers = #tpu.dot_dimension_numbers<[1], [0], [0], [1], [0, 0, 1, 1], [], []>} : vector<2x32xf32>, vector<32x128xf32>, vector<2x128xf32> -> vector<2x128xf32>
    %47 = vector.broadcast %1 : vector<1x128xf32> to vector<2x128xf32>
    %48 = arith.addf %46, %47 : vector<2x128xf32>
    %cst_20 = arith.constant 0.000000e+00 : f32
    %49 = vector.broadcast %cst_20 : f32 to vector<2x128xf32>
    %50 = arith.maximumf %48, %49 : vector<2x128xf32>
    %51 = math.absf %48 : vector<2x128xf32>
    %cst_21 = arith.constant 0.000000e+00 : f32
    %52 = vector.broadcast %cst_21 : f32 to vector<2x128xf32>
    %53 = arith.subf %52, %51 : vector<2x128xf32>
    %54 = math.exp %53 : vector<2x128xf32>
    %55 = math.log1p %54 : vector<2x128xf32>
    %56 = arith.addf %50, %55 : vector<2x128xf32>
    %57 = arith.select %9, %48, %56 : vector<2x128xi1>, vector<2x128xf32>
    %58 = arith.select %9, %33, %57 : vector<2x128xi1>, vector<2x128xf32>
    %59 = vector.extract_strided_slice %58 {offsets = [0, 0], sizes = [1, 128], strides = [1, 1]} : vector<2x128xf32> to vector<1x128xf32>
    %c0_22 = arith.constant 0 : index
    %c0_23 = arith.constant 0 : index
    %60 = vector.load %arg4[%c0_22, %c0_23] : memref<16x128xf32, #tpu.memory_space<vmem>>, vector<1x128xf32>
    tpu.vector_store %arg4[%c0_22, %c0_23], %59 {strides = array<i32>} : memref<16x128xf32, #tpu.memory_space<vmem>>, vector<1x128xf32>,
    %61 = vector.extract_strided_slice %58 {offsets = [1, 0], sizes = [1, 128], strides = [1, 1]} : vector<2x128xf32> to vector<1x128xf32>
    %c8 = arith.constant 8 : index
    %c0_24 = arith.constant 0 : index
    %62 = vector.load %arg4[%c8, %c0_24] : memref<16x128xf32, #tpu.memory_space<vmem>>, vector<1x128xf32>
    tpu.vector_store %arg4[%c8, %c0_24], %61 {strides = array<i32>} : memref<16x128xf32, #tpu.memory_space<vmem>>, vector<1x128xf32>,
    %c0_25 = arith.constant 0 : index
    %c0_26 = arith.constant 0 : index
    %63 = vector.load %arg0[%c0_25, %c0_26] : memref<16x4xf32, #tpu.memory_space<vmem>>, vector<16x4xf32>
    %cst_27 = arith.constant dense<0.000000e+00> : vector<16x32xf32>
    %64 = tpu.matmul %63, %2, %cst_27 {dimension_numbers = #tpu.dot_dimension_numbers<[1], [0], [0], [1], [0, 0, 1, 1], [], []>} : vector<16x4xf32>, vector<4x32xf32>, vector<16x32xf32> -> vector<16x32xf32>
    %65 = tpu.iota {dimensions = array<i32: 0>} : vector<14x16xi32>
    %66 = tpu.iota {dimensions = array<i32: 1>} : vector<14x16xi32>
    %c0_i32 = arith.constant 0 : i32
    %67 = vector.broadcast %c0_i32 : i32 to vector<14x16xi32>
    %68 = arith.cmpi sge, %65, %67 : vector<14x16xi32>
    %c2_i32 = arith.constant 2 : i32
    %69 = vector.broadcast %c2_i32 : i32 to vector<14x16xi32>
    %70 = arith.cmpi slt, %65, %69 : vector<14x16xi32>
    %71 = arith.andi %68, %70 : vector<14x16xi1>
    %c0_i32_28 = arith.constant 0 : i32
    %72 = vector.broadcast %c0_i32_28 : i32 to vector<14x16xi32>
    %73 = arith.subi %65, %72 : vector<14x16xi32>
    %c8_i32 = arith.constant 8 : i32
    %74 = vector.broadcast %c8_i32 : i32 to vector<14x16xi32>
    %75 = arith.muli %73, %74 : vector<14x16xi32>
    %c0_i32_29 = arith.constant 0 : i32
    %76 = vector.broadcast %c0_i32_29 : i32 to vector<14x16xi32>
    %77 = arith.addi %75, %76 : vector<14x16xi32>
    %78 = arith.cmpi eq, %66, %77 : vector<14x16xi32>
    %79 = arith.andi %71, %78 : vector<14x16xi1>
    %c2_i32_30 = arith.constant 2 : i32
    %80 = vector.broadcast %c2_i32_30 : i32 to vector<14x16xi32>
    %81 = arith.cmpi sge, %65, %80 : vector<14x16xi32>
    %c4_i32_31 = arith.constant 4 : i32
    %82 = vector.broadcast %c4_i32_31 : i32 to vector<14x16xi32>
    %83 = arith.cmpi slt, %65, %82 : vector<14x16xi32>
    %84 = arith.andi %81, %83 : vector<14x16xi1>
    %c2_i32_32 = arith.constant 2 : i32
    %85 = vector.broadcast %c2_i32_32 : i32 to vector<14x16xi32>
    %86 = arith.subi %65, %85 : vector<14x16xi32>
    %c8_i32_33 = arith.constant 8 : i32
    %87 = vector.broadcast %c8_i32_33 : i32 to vector<14x16xi32>
    %88 = arith.muli %86, %87 : vector<14x16xi32>
    %c1_i32 = arith.constant 1 : i32
    %89 = vector.broadcast %c1_i32 : i32 to vector<14x16xi32>
    %90 = arith.addi %88, %89 : vector<14x16xi32>
    %91 = arith.cmpi eq, %66, %90 : vector<14x16xi32>
    %92 = arith.andi %84, %91 : vector<14x16xi1>
    %c4_i32_34 = arith.constant 4 : i32
    %93 = vector.broadcast %c4_i32_34 : i32 to vector<14x16xi32>
    %94 = arith.cmpi sge, %65, %93 : vector<14x16xi32>
    %c6_i32 = arith.constant 6 : i32
    %95 = vector.broadcast %c6_i32 : i32 to vector<14x16xi32>
    %96 = arith.cmpi slt, %65, %95 : vector<14x16xi32>
    %97 = arith.andi %94, %96 : vector<14x16xi1>
    %c4_i32_35 = arith.constant 4 : i32
    %98 = vector.broadcast %c4_i32_35 : i32 to vector<14x16xi32>
    %99 = arith.subi %65, %98 : vector<14x16xi32>
    %c8_i32_36 = arith.constant 8 : i32
    %100 = vector.broadcast %c8_i32_36 : i32 to vector<14x16xi32>
    %101 = arith.muli %99, %100 : vector<14x16xi32>
    %c2_i32_37 = arith.constant 2 : i32
    %102 = vector.broadcast %c2_i32_37 : i32 to vector<14x16xi32>
    %103 = arith.addi %101, %102 : vector<14x16xi32>
    %104 = arith.cmpi eq, %66, %103 : vector<14x16xi32>
    %105 = arith.andi %97, %104 : vector<14x16xi1>
    %c6_i32_38 = arith.constant 6 : i32
    %106 = vector.broadcast %c6_i32_38 : i32 to vector<14x16xi32>
    %107 = arith.cmpi sge, %65, %106 : vector<14x16xi32>
    %c8_i32_39 = arith.constant 8 : i32
    %108 = vector.broadcast %c8_i32_39 : i32 to vector<14x16xi32>
    %109 = arith.cmpi slt, %65, %108 : vector<14x16xi32>
    %110 = arith.andi %107, %109 : vector<14x16xi1>
    %c6_i32_40 = arith.constant 6 : i32
    %111 = vector.broadcast %c6_i32_40 : i32 to vector<14x16xi32>
    %112 = arith.subi %65, %111 : vector<14x16xi32>
    %c8_i32_41 = arith.constant 8 : i32
    %113 = vector.broadcast %c8_i32_41 : i32 to vector<14x16xi32>
    %114 = arith.muli %112, %113 : vector<14x16xi32>
    %c3_i32 = arith.constant 3 : i32
    %115 = vector.broadcast %c3_i32 : i32 to vector<14x16xi32>
    %116 = arith.addi %114, %115 : vector<14x16xi32>
    %117 = arith.cmpi eq, %66, %116 : vector<14x16xi32>
    %118 = arith.andi %110, %117 : vector<14x16xi1>
    %c8_i32_42 = arith.constant 8 : i32
    %119 = vector.broadcast %c8_i32_42 : i32 to vector<14x16xi32>
    %120 = arith.cmpi sge, %65, %119 : vector<14x16xi32>
    %c10_i32 = arith.constant 10 : i32
    %121 = vector.broadcast %c10_i32 : i32 to vector<14x16xi32>
    %122 = arith.cmpi slt, %65, %121 : vector<14x16xi32>
    %123 = arith.andi %120, %122 : vector<14x16xi1>
    %c8_i32_43 = arith.constant 8 : i32
    %124 = vector.broadcast %c8_i32_43 : i32 to vector<14x16xi32>
    %125 = arith.subi %65, %124 : vector<14x16xi32>
    %c8_i32_44 = arith.constant 8 : i32
    %126 = vector.broadcast %c8_i32_44 : i32 to vector<14x16xi32>
    %127 = arith.muli %125, %126 : vector<14x16xi32>
    %c4_i32_45 = arith.constant 4 : i32
    %128 = vector.broadcast %c4_i32_45 : i32 to vector<14x16xi32>
    %129 = arith.addi %127, %128 : vector<14x16xi32>
    %130 = arith.cmpi eq, %66, %129 : vector<14x16xi32>
    %131 = arith.andi %123, %130 : vector<14x16xi1>
    %c10_i32_46 = arith.constant 10 : i32
    %132 = vector.broadcast %c10_i32_46 : i32 to vector<14x16xi32>
    %133 = arith.cmpi sge, %65, %132 : vector<14x16xi32>
    %c12_i32 = arith.constant 12 : i32
    %134 = vector.broadcast %c12_i32 : i32 to vector<14x16xi32>
    %135 = arith.cmpi slt, %65, %134 : vector<14x16xi32>
    %136 = arith.andi %133, %135 : vector<14x16xi1>
    %c10_i32_47 = arith.constant 10 : i32
    %137 = vector.broadcast %c10_i32_47 : i32 to vector<14x16xi32>
    %138 = arith.subi %65, %137 : vector<14x16xi32>
    %c8_i32_48 = arith.constant 8 : i32
    %139 = vector.broadcast %c8_i32_48 : i32 to vector<14x16xi32>
    %140 = arith.muli %138, %139 : vector<14x16xi32>
    %c5_i32 = arith.constant 5 : i32
    %141 = vector.broadcast %c5_i32 : i32 to vector<14x16xi32>
    %142 = arith.addi %140, %141 : vector<14x16xi32>
    %143 = arith.cmpi eq, %66, %142 : vector<14x16xi32>
    %144 = arith.andi %136, %143 : vector<14x16xi1>
    %c12_i32_49 = arith.constant 12 : i32
    %145 = vector.broadcast %c12_i32_49 : i32 to vector<14x16xi32>
    %146 = arith.cmpi sge, %65, %145 : vector<14x16xi32>
    %c14_i32 = arith.constant 14 : i32
    %147 = vector.broadcast %c14_i32 : i32 to vector<14x16xi32>
    %148 = arith.cmpi slt, %65, %147 : vector<14x16xi32>
    %149 = arith.andi %146, %148 : vector<14x16xi1>
    %c12_i32_50 = arith.constant 12 : i32
    %150 = vector.broadcast %c12_i32_50 : i32 to vector<14x16xi32>
    %151 = arith.subi %65, %150 : vector<14x16xi32>
    %c8_i32_51 = arith.constant 8 : i32
    %152 = vector.broadcast %c8_i32_51 : i32 to vector<14x16xi32>
    %153 = arith.muli %151, %152 : vector<14x16xi32>
    %c6_i32_52 = arith.constant 6 : i32
    %154 = vector.broadcast %c6_i32_52 : i32 to vector<14x16xi32>
    %155 = arith.addi %153, %154 : vector<14x16xi32>
    %156 = arith.cmpi eq, %66, %155 : vector<14x16xi32>
    %157 = arith.andi %149, %156 : vector<14x16xi1>
    %158 = arith.ori %79, %92 : vector<14x16xi1>
    %159 = arith.ori %158, %105 : vector<14x16xi1>
    %160 = arith.ori %159, %118 : vector<14x16xi1>
    %161 = arith.ori %160, %131 : vector<14x16xi1>
    %162 = arith.ori %161, %144 : vector<14x16xi1>
    %163 = arith.ori %162, %157 : vector<14x16xi1>
    %cst_53 = arith.constant 1.000000e+00 : f32
    %cst_54 = arith.constant 0.000000e+00 : f32
    %164 = vector.broadcast %cst_53 : f32 to vector<14x16xf32>
    %165 = vector.broadcast %cst_54 : f32 to vector<14x16xf32>
    %166 = arith.select %163, %164, %165 : vector<14x16xi1>, vector<14x16xf32>
    %cst_55 = arith.constant dense<0.000000e+00> : vector<14x32xf32>
    %167 = tpu.matmul %166, %64, %cst_55 {dimension_numbers = #tpu.dot_dimension_numbers<[1], [0], [0], [1], [0, 0, 1, 1], [], []>} : vector<14x16xf32>, vector<16x32xf32>, vector<14x32xf32> -> vector<14x32xf32>
    %168 = vector.broadcast %4 : vector<1x32xf32> to vector<14x32xf32>
    %169 = arith.addf %167, %168 : vector<14x32xf32>
    %170 = vector.extract_strided_slice %169 {offsets = [0, 0], sizes = [2, 32], strides = [1, 1]} : vector<14x32xf32> to vector<2x32xf32>
    %171 = math.tanh %170 : vector<2x32xf32>
    %cst_56 = arith.constant dense<0.000000e+00> : vector<2x32xf32>
    %172 = tpu.matmul %171, %5, %cst_56 {dimension_numbers = #tpu.dot_dimension_numbers<[1], [0], [0], [1], [0, 0, 1, 1], [], []>} : vector<2x32xf32>, vector<32x32xf32>, vector<2x32xf32> -> vector<2x32xf32>
    %173 = vector.broadcast %6 : vector<1x32xf32> to vector<2x32xf32>
    %174 = arith.addf %172, %173 : vector<2x32xf32>
    %cst_57 = arith.constant 0.000000e+00 : f32
    %175 = vector.broadcast %cst_57 : f32 to vector<2x32xf32>
    %176 = arith.maximumf %174, %175 : vector<2x32xf32>
    %177 = math.absf %174 : vector<2x32xf32>
    %cst_58 = arith.constant 0.000000e+00 : f32
    %178 = vector.broadcast %cst_58 : f32 to vector<2x32xf32>
    %179 = arith.subf %178, %177 : vector<2x32xf32>
    %180 = math.exp %179 : vector<2x32xf32>
    %181 = math.log1p %180 : vector<2x32xf32>
    %182 = arith.addf %176, %181 : vector<2x32xf32>
    %cst_59 = arith.constant dense<0.000000e+00> : vector<2x128xf32>
    %183 = tpu.matmul %182, %0, %cst_59 {dimension_numbers = #tpu.dot_dimension_numbers<[1], [0], [0], [1], [0, 0, 1, 1], [], []>} : vector<2x32xf32>, vector<32x128xf32>, vector<2x128xf32> -> vector<2x128xf32>
    %184 = vector.broadcast %1 : vector<1x128xf32> to vector<2x128xf32>
    %185 = arith.addf %183, %184 : vector<2x128xf32>
    %cst_60 = arith.constant 0.000000e+00 : f32
    %186 = vector.broadcast %cst_60 : f32 to vector<2x128xf32>
    %187 = arith.maximumf %185, %186 : vector<2x128xf32>
    %188 = math.absf %185 : vector<2x128xf32>
    %cst_61 = arith.constant 0.000000e+00 : f32
    %189 = vector.broadcast %cst_61 : f32 to vector<2x128xf32>
    %190 = arith.subf %189, %188 : vector<2x128xf32>
    %191 = math.exp %190 : vector<2x128xf32>
    %192 = math.log1p %191 : vector<2x128xf32>
    %193 = arith.addf %187, %192 : vector<2x128xf32>
    %194 = arith.select %9, %185, %193 : vector<2x128xi1>, vector<2x128xf32>
    %195 = vector.extract_strided_slice %194 {offsets = [0, 0], sizes = [1, 128], strides = [1, 1]} : vector<2x128xf32> to vector<1x128xf32>
    %c1 = arith.constant 1 : index
    %c0_62 = arith.constant 0 : index
    %196 = vector.load %arg4[%c1, %c0_62] : memref<16x128xf32, #tpu.memory_space<vmem>>, vector<1x128xf32>
    tpu.vector_store %arg4[%c1, %c0_62], %195 {strides = array<i32>} : memref<16x128xf32, #tpu.memory_space<vmem>>, vector<1x128xf32>,
    %197 = vector.extract_strided_slice %194 {offsets = [1, 0], sizes = [1, 128], strides = [1, 1]} : vector<2x128xf32> to vector<1x128xf32>
    %c9 = arith.constant 9 : index
    %c0_63 = arith.constant 0 : index
    %198 = vector.load %arg4[%c9, %c0_63] : memref<16x128xf32, #tpu.memory_space<vmem>>, vector<1x128xf32>
    tpu.vector_store %arg4[%c9, %c0_63], %197 {strides = array<i32>} : memref<16x128xf32, #tpu.memory_space<vmem>>, vector<1x128xf32>,
    %199 = vector.extract_strided_slice %169 {offsets = [2, 0], sizes = [2, 32], strides = [1, 1]} : vector<14x32xf32> to vector<2x32xf32>
    %cst_64 = arith.constant dense<0.000000e+00> : vector<2x32xf32>
    %200 = tpu.matmul %171, %3, %cst_64 {dimension_numbers = #tpu.dot_dimension_numbers<[1], [0], [0], [1], [0, 0, 1, 1], [], []>} : vector<2x32xf32>, vector<32x32xf32>, vector<2x32xf32> -> vector<2x32xf32>
    %201 = arith.addf %199, %200 : vector<2x32xf32>
    %202 = math.tanh %201 : vector<2x32xf32>
    %cst_65 = arith.constant dense<0.000000e+00> : vector<2x32xf32>
    %203 = tpu.matmul %202, %5, %cst_65 {dimension_numbers = #tpu.dot_dimension_numbers<[1], [0], [0], [1], [0, 0, 1, 1], [], []>} : vector<2x32xf32>, vector<32x32xf32>, vector<2x32xf32> -> vector<2x32xf32>
    %204 = vector.broadcast %6 : vector<1x32xf32> to vector<2x32xf32>
    %205 = arith.addf %203, %204 : vector<2x32xf32>
    %cst_66 = arith.constant 0.000000e+00 : f32
    %206 = vector.broadcast %cst_66 : f32 to vector<2x32xf32>
    %207 = arith.maximumf %205, %206 : vector<2x32xf32>
    %208 = math.absf %205 : vector<2x32xf32>
    %cst_67 = arith.constant 0.000000e+00 : f32
    %209 = vector.broadcast %cst_67 : f32 to vector<2x32xf32>
    %210 = arith.subf %209, %208 : vector<2x32xf32>
    %211 = math.exp %210 : vector<2x32xf32>
    %212 = math.log1p %211 : vector<2x32xf32>
    %213 = arith.addf %207, %212 : vector<2x32xf32>
    %cst_68 = arith.constant dense<0.000000e+00> : vector<2x128xf32>
    %214 = tpu.matmul %213, %0, %cst_68 {dimension_numbers = #tpu.dot_dimension_numbers<[1], [0], [0], [1], [0, 0, 1, 1], [], []>} : vector<2x32xf32>, vector<32x128xf32>, vector<2x128xf32> -> vector<2x128xf32>
    %215 = vector.broadcast %1 : vector<1x128xf32> to vector<2x128xf32>
    %216 = arith.addf %214, %215 : vector<2x128xf32>
    %cst_69 = arith.constant 0.000000e+00 : f32
    %217 = vector.broadcast %cst_69 : f32 to vector<2x128xf32>
    %218 = arith.maximumf %216, %217 : vector<2x128xf32>
    %219 = math.absf %216 : vector<2x128xf32>
    %cst_70 = arith.constant 0.000000e+00 : f32
    %220 = vector.broadcast %cst_70 : f32 to vector<2x128xf32>
    %221 = arith.subf %220, %219 : vector<2x128xf32>
    %222 = math.exp %221 : vector<2x128xf32>
    %223 = math.log1p %222 : vector<2x128xf32>
    %224 = arith.addf %218, %223 : vector<2x128xf32>
    %225 = arith.select %9, %216, %224 : vector<2x128xi1>, vector<2x128xf32>
    %226 = vector.extract_strided_slice %225 {offsets = [0, 0], sizes = [1, 128], strides = [1, 1]} : vector<2x128xf32> to vector<1x128xf32>
    %c2 = arith.constant 2 : index
    %c0_71 = arith.constant 0 : index
    %227 = vector.load %arg4[%c2, %c0_71] : memref<16x128xf32, #tpu.memory_space<vmem>>, vector<1x128xf32>
    tpu.vector_store %arg4[%c2, %c0_71], %226 {strides = array<i32>} : memref<16x128xf32, #tpu.memory_space<vmem>>, vector<1x128xf32>,
    %228 = vector.extract_strided_slice %225 {offsets = [1, 0], sizes = [1, 128], strides = [1, 1]} : vector<2x128xf32> to vector<1x128xf32>
    %c10 = arith.constant 10 : index
    %c0_72 = arith.constant 0 : index
    %229 = vector.load %arg4[%c10, %c0_72] : memref<16x128xf32, #tpu.memory_space<vmem>>, vector<1x128xf32>
    tpu.vector_store %arg4[%c10, %c0_72], %228 {strides = array<i32>} : memref<16x128xf32, #tpu.memory_space<vmem>>, vector<1x128xf32>,
    %230 = vector.extract_strided_slice %169 {offsets = [4, 0], sizes = [2, 32], strides = [1, 1]} : vector<14x32xf32> to vector<2x32xf32>
    %cst_73 = arith.constant dense<0.000000e+00> : vector<2x32xf32>
    %231 = tpu.matmul %202, %3, %cst_73 {dimension_numbers = #tpu.dot_dimension_numbers<[1], [0], [0], [1], [0, 0, 1, 1], [], []>} : vector<2x32xf32>, vector<32x32xf32>, vector<2x32xf32> -> vector<2x32xf32>
    %232 = arith.addf %230, %231 : vector<2x32xf32>
    %233 = math.tanh %232 : vector<2x32xf32>
    %cst_74 = arith.constant dense<0.000000e+00> : vector<2x32xf32>
    %234 = tpu.matmul %233, %5, %cst_74 {dimension_numbers = #tpu.dot_dimension_numbers<[1], [0], [0], [1], [0, 0, 1, 1], [], []>} : vector<2x32xf32>, vector<32x32xf32>, vector<2x32xf32> -> vector<2x32xf32>
    %235 = vector.broadcast %6 : vector<1x32xf32> to vector<2x32xf32>
    %236 = arith.addf %234, %235 : vector<2x32xf32>
    %cst_75 = arith.constant 0.000000e+00 : f32
    %237 = vector.broadcast %cst_75 : f32 to vector<2x32xf32>
    %238 = arith.maximumf %236, %237 : vector<2x32xf32>
    %239 = math.absf %236 : vector<2x32xf32>
    %cst_76 = arith.constant 0.000000e+00 : f32
    %240 = vector.broadcast %cst_76 : f32 to vector<2x32xf32>
    %241 = arith.subf %240, %239 : vector<2x32xf32>
    %242 = math.exp %241 : vector<2x32xf32>
    %243 = math.log1p %242 : vector<2x32xf32>
    %244 = arith.addf %238, %243 : vector<2x32xf32>
    %cst_77 = arith.constant dense<0.000000e+00> : vector<2x128xf32>
    %245 = tpu.matmul %244, %0, %cst_77 {dimension_numbers = #tpu.dot_dimension_numbers<[1], [0], [0], [1], [0, 0, 1, 1], [], []>} : vector<2x32xf32>, vector<32x128xf32>, vector<2x128xf32> -> vector<2x128xf32>
    %246 = vector.broadcast %1 : vector<1x128xf32> to vector<2x128xf32>
    %247 = arith.addf %245, %246 : vector<2x128xf32>
    %cst_78 = arith.constant 0.000000e+00 : f32
    %248 = vector.broadcast %cst_78 : f32 to vector<2x128xf32>
    %249 = arith.maximumf %247, %248 : vector<2x128xf32>
    %250 = math.absf %247 : vector<2x128xf32>
    %cst_79 = arith.constant 0.000000e+00 : f32
    %251 = vector.broadcast %cst_79 : f32 to vector<2x128xf32>
    %252 = arith.subf %251, %250 : vector<2x128xf32>
    %253 = math.exp %252 : vector<2x128xf32>
    %254 = math.log1p %253 : vector<2x128xf32>
    %255 = arith.addf %249, %254 : vector<2x128xf32>
    %256 = arith.select %9, %247, %255 : vector<2x128xi1>, vector<2x128xf32>
    %257 = vector.extract_strided_slice %256 {offsets = [0, 0], sizes = [1, 128], strides = [1, 1]} : vector<2x128xf32> to vector<1x128xf32>
    %c3 = arith.constant 3 : index
    %c0_80 = arith.constant 0 : index
    %258 = vector.load %arg4[%c3, %c0_80] : memref<16x128xf32, #tpu.memory_space<vmem>>, vector<1x128xf32>
    tpu.vector_store %arg4[%c3, %c0_80], %257 {strides = array<i32>} : memref<16x128xf32, #tpu.memory_space<vmem>>, vector<1x128xf32>,
    %259 = vector.extract_strided_slice %256 {offsets = [1, 0], sizes = [1, 128], strides = [1, 1]} : vector<2x128xf32> to vector<1x128xf32>
    %c11 = arith.constant 11 : index
    %c0_81 = arith.constant 0 : index
    %260 = vector.load %arg4[%c11, %c0_81] : memref<16x128xf32, #tpu.memory_space<vmem>>, vector<1x128xf32>
    tpu.vector_store %arg4[%c11, %c0_81], %259 {strides = array<i32>} : memref<16x128xf32, #tpu.memory_space<vmem>>, vector<1x128xf32>,
    %261 = vector.extract_strided_slice %169 {offsets = [6, 0], sizes = [2, 32], strides = [1, 1]} : vector<14x32xf32> to vector<2x32xf32>
    %cst_82 = arith.constant dense<0.000000e+00> : vector<2x32xf32>
    %262 = tpu.matmul %233, %3, %cst_82 {dimension_numbers = #tpu.dot_dimension_numbers<[1], [0], [0], [1], [0, 0, 1, 1], [], []>} : vector<2x32xf32>, vector<32x32xf32>, vector<2x32xf32> -> vector<2x32xf32>
    %263 = arith.addf %261, %262 : vector<2x32xf32>
    %264 = math.tanh %263 : vector<2x32xf32>
    %cst_83 = arith.constant dense<0.000000e+00> : vector<2x32xf32>
    %265 = tpu.matmul %264, %5, %cst_83 {dimension_numbers = #tpu.dot_dimension_numbers<[1], [0], [0], [1], [0, 0, 1, 1], [], []>} : vector<2x32xf32>, vector<32x32xf32>, vector<2x32xf32> -> vector<2x32xf32>
    %266 = vector.broadcast %6 : vector<1x32xf32> to vector<2x32xf32>
    %267 = arith.addf %265, %266 : vector<2x32xf32>
    %cst_84 = arith.constant 0.000000e+00 : f32
    %268 = vector.broadcast %cst_84 : f32 to vector<2x32xf32>
    %269 = arith.maximumf %267, %268 : vector<2x32xf32>
    %270 = math.absf %267 : vector<2x32xf32>
    %cst_85 = arith.constant 0.000000e+00 : f32
    %271 = vector.broadcast %cst_85 : f32 to vector<2x32xf32>
    %272 = arith.subf %271, %270 : vector<2x32xf32>
    %273 = math.exp %272 : vector<2x32xf32>
    %274 = math.log1p %273 : vector<2x32xf32>
    %275 = arith.addf %269, %274 : vector<2x32xf32>
    %cst_86 = arith.constant dense<0.000000e+00> : vector<2x128xf32>
    %276 = tpu.matmul %275, %0, %cst_86 {dimension_numbers = #tpu.dot_dimension_numbers<[1], [0], [0], [1], [0, 0, 1, 1], [], []>} : vector<2x32xf32>, vector<32x128xf32>, vector<2x128xf32> -> vector<2x128xf32>
    %277 = vector.broadcast %1 : vector<1x128xf32> to vector<2x128xf32>
    %278 = arith.addf %276, %277 : vector<2x128xf32>
    %cst_87 = arith.constant 0.000000e+00 : f32
    %279 = vector.broadcast %cst_87 : f32 to vector<2x128xf32>
    %280 = arith.maximumf %278, %279 : vector<2x128xf32>
    %281 = math.absf %278 : vector<2x128xf32>
    %cst_88 = arith.constant 0.000000e+00 : f32
    %282 = vector.broadcast %cst_88 : f32 to vector<2x128xf32>
    %283 = arith.subf %282, %281 : vector<2x128xf32>
    %284 = math.exp %283 : vector<2x128xf32>
    %285 = math.log1p %284 : vector<2x128xf32>
    %286 = arith.addf %280, %285 : vector<2x128xf32>
    %287 = arith.select %9, %278, %286 : vector<2x128xi1>, vector<2x128xf32>
    %288 = vector.extract_strided_slice %287 {offsets = [0, 0], sizes = [1, 128], strides = [1, 1]} : vector<2x128xf32> to vector<1x128xf32>
    %c4 = arith.constant 4 : index
    %c0_89 = arith.constant 0 : index
    %289 = vector.load %arg4[%c4, %c0_89] : memref<16x128xf32, #tpu.memory_space<vmem>>, vector<1x128xf32>
    tpu.vector_store %arg4[%c4, %c0_89], %288 {strides = array<i32>} : memref<16x128xf32, #tpu.memory_space<vmem>>, vector<1x128xf32>,
    %290 = vector.extract_strided_slice %287 {offsets = [1, 0], sizes = [1, 128], strides = [1, 1]} : vector<2x128xf32> to vector<1x128xf32>
    %c12 = arith.constant 12 : index
    %c0_90 = arith.constant 0 : index
    %291 = vector.load %arg4[%c12, %c0_90] : memref<16x128xf32, #tpu.memory_space<vmem>>, vector<1x128xf32>
    tpu.vector_store %arg4[%c12, %c0_90], %290 {strides = array<i32>} : memref<16x128xf32, #tpu.memory_space<vmem>>, vector<1x128xf32>,
    %292 = vector.extract_strided_slice %169 {offsets = [8, 0], sizes = [2, 32], strides = [1, 1]} : vector<14x32xf32> to vector<2x32xf32>
    %cst_91 = arith.constant dense<0.000000e+00> : vector<2x32xf32>
    %293 = tpu.matmul %264, %3, %cst_91 {dimension_numbers = #tpu.dot_dimension_numbers<[1], [0], [0], [1], [0, 0, 1, 1], [], []>} : vector<2x32xf32>, vector<32x32xf32>, vector<2x32xf32> -> vector<2x32xf32>
    %294 = arith.addf %292, %293 : vector<2x32xf32>
    %295 = math.tanh %294 : vector<2x32xf32>
    %cst_92 = arith.constant dense<0.000000e+00> : vector<2x32xf32>
    %296 = tpu.matmul %295, %5, %cst_92 {dimension_numbers = #tpu.dot_dimension_numbers<[1], [0], [0], [1], [0, 0, 1, 1], [], []>} : vector<2x32xf32>, vector<32x32xf32>, vector<2x32xf32> -> vector<2x32xf32>
    %297 = vector.broadcast %6 : vector<1x32xf32> to vector<2x32xf32>
    %298 = arith.addf %296, %297 : vector<2x32xf32>
    %cst_93 = arith.constant 0.000000e+00 : f32
    %299 = vector.broadcast %cst_93 : f32 to vector<2x32xf32>
    %300 = arith.maximumf %298, %299 : vector<2x32xf32>
    %301 = math.absf %298 : vector<2x32xf32>
    %cst_94 = arith.constant 0.000000e+00 : f32
    %302 = vector.broadcast %cst_94 : f32 to vector<2x32xf32>
    %303 = arith.subf %302, %301 : vector<2x32xf32>
    %304 = math.exp %303 : vector<2x32xf32>
    %305 = math.log1p %304 : vector<2x32xf32>
    %306 = arith.addf %300, %305 : vector<2x32xf32>
    %cst_95 = arith.constant dense<0.000000e+00> : vector<2x128xf32>
    %307 = tpu.matmul %306, %0, %cst_95 {dimension_numbers = #tpu.dot_dimension_numbers<[1], [0], [0], [1], [0, 0, 1, 1], [], []>} : vector<2x32xf32>, vector<32x128xf32>, vector<2x128xf32> -> vector<2x128xf32>
    %308 = vector.broadcast %1 : vector<1x128xf32> to vector<2x128xf32>
    %309 = arith.addf %307, %308 : vector<2x128xf32>
    %cst_96 = arith.constant 0.000000e+00 : f32
    %310 = vector.broadcast %cst_96 : f32 to vector<2x128xf32>
    %311 = arith.maximumf %309, %310 : vector<2x128xf32>
    %312 = math.absf %309 : vector<2x128xf32>
    %cst_97 = arith.constant 0.000000e+00 : f32
    %313 = vector.broadcast %cst_97 : f32 to vector<2x128xf32>
    %314 = arith.subf %313, %312 : vector<2x128xf32>
    %315 = math.exp %314 : vector<2x128xf32>
    %316 = math.log1p %315 : vector<2x128xf32>
    %317 = arith.addf %311, %316 : vector<2x128xf32>
    %318 = arith.select %9, %309, %317 : vector<2x128xi1>, vector<2x128xf32>
    %319 = vector.extract_strided_slice %318 {offsets = [0, 0], sizes = [1, 128], strides = [1, 1]} : vector<2x128xf32> to vector<1x128xf32>
    %c5 = arith.constant 5 : index
    %c0_98 = arith.constant 0 : index
    %320 = vector.load %arg4[%c5, %c0_98] : memref<16x128xf32, #tpu.memory_space<vmem>>, vector<1x128xf32>
    tpu.vector_store %arg4[%c5, %c0_98], %319 {strides = array<i32>} : memref<16x128xf32, #tpu.memory_space<vmem>>, vector<1x128xf32>,
    %321 = vector.extract_strided_slice %318 {offsets = [1, 0], sizes = [1, 128], strides = [1, 1]} : vector<2x128xf32> to vector<1x128xf32>
    %c13 = arith.constant 13 : index
    %c0_99 = arith.constant 0 : index
    %322 = vector.load %arg4[%c13, %c0_99] : memref<16x128xf32, #tpu.memory_space<vmem>>, vector<1x128xf32>
    tpu.vector_store %arg4[%c13, %c0_99], %321 {strides = array<i32>} : memref<16x128xf32, #tpu.memory_space<vmem>>, vector<1x128xf32>,
    %323 = vector.extract_strided_slice %169 {offsets = [10, 0], sizes = [2, 32], strides = [1, 1]} : vector<14x32xf32> to vector<2x32xf32>
    %cst_100 = arith.constant dense<0.000000e+00> : vector<2x32xf32>
    %324 = tpu.matmul %295, %3, %cst_100 {dimension_numbers = #tpu.dot_dimension_numbers<[1], [0], [0], [1], [0, 0, 1, 1], [], []>} : vector<2x32xf32>, vector<32x32xf32>, vector<2x32xf32> -> vector<2x32xf32>
    %325 = arith.addf %323, %324 : vector<2x32xf32>
    %326 = math.tanh %325 : vector<2x32xf32>
    %cst_101 = arith.constant dense<0.000000e+00> : vector<2x32xf32>
    %327 = tpu.matmul %326, %5, %cst_101 {dimension_numbers = #tpu.dot_dimension_numbers<[1], [0], [0], [1], [0, 0, 1, 1], [], []>} : vector<2x32xf32>, vector<32x32xf32>, vector<2x32xf32> -> vector<2x32xf32>
    %328 = vector.broadcast %6 : vector<1x32xf32> to vector<2x32xf32>
    %329 = arith.addf %327, %328 : vector<2x32xf32>
    %cst_102 = arith.constant 0.000000e+00 : f32
    %330 = vector.broadcast %cst_102 : f32 to vector<2x32xf32>
    %331 = arith.maximumf %329, %330 : vector<2x32xf32>
    %332 = math.absf %329 : vector<2x32xf32>
    %cst_103 = arith.constant 0.000000e+00 : f32
    %333 = vector.broadcast %cst_103 : f32 to vector<2x32xf32>
    %334 = arith.subf %333, %332 : vector<2x32xf32>
    %335 = math.exp %334 : vector<2x32xf32>
    %336 = math.log1p %335 : vector<2x32xf32>
    %337 = arith.addf %331, %336 : vector<2x32xf32>
    %cst_104 = arith.constant dense<0.000000e+00> : vector<2x128xf32>
    %338 = tpu.matmul %337, %0, %cst_104 {dimension_numbers = #tpu.dot_dimension_numbers<[1], [0], [0], [1], [0, 0, 1, 1], [], []>} : vector<2x32xf32>, vector<32x128xf32>, vector<2x128xf32> -> vector<2x128xf32>
    %339 = vector.broadcast %1 : vector<1x128xf32> to vector<2x128xf32>
    %340 = arith.addf %338, %339 : vector<2x128xf32>
    %cst_105 = arith.constant 0.000000e+00 : f32
    %341 = vector.broadcast %cst_105 : f32 to vector<2x128xf32>
    %342 = arith.maximumf %340, %341 : vector<2x128xf32>
    %343 = math.absf %340 : vector<2x128xf32>
    %cst_106 = arith.constant 0.000000e+00 : f32
    %344 = vector.broadcast %cst_106 : f32 to vector<2x128xf32>
    %345 = arith.subf %344, %343 : vector<2x128xf32>
    %346 = math.exp %345 : vector<2x128xf32>
    %347 = math.log1p %346 : vector<2x128xf32>
    %348 = arith.addf %342, %347 : vector<2x128xf32>
    %349 = arith.select %9, %340, %348 : vector<2x128xi1>, vector<2x128xf32>
    %350 = vector.extract_strided_slice %349 {offsets = [0, 0], sizes = [1, 128], strides = [1, 1]} : vector<2x128xf32> to vector<1x128xf32>
    %c6 = arith.constant 6 : index
    %c0_107 = arith.constant 0 : index
    %351 = vector.load %arg4[%c6, %c0_107] : memref<16x128xf32, #tpu.memory_space<vmem>>, vector<1x128xf32>
    tpu.vector_store %arg4[%c6, %c0_107], %350 {strides = array<i32>} : memref<16x128xf32, #tpu.memory_space<vmem>>, vector<1x128xf32>,
    %352 = vector.extract_strided_slice %349 {offsets = [1, 0], sizes = [1, 128], strides = [1, 1]} : vector<2x128xf32> to vector<1x128xf32>
    %c14 = arith.constant 14 : index
    %c0_108 = arith.constant 0 : index
    %353 = vector.load %arg4[%c14, %c0_108] : memref<16x128xf32, #tpu.memory_space<vmem>>, vector<1x128xf32>
    tpu.vector_store %arg4[%c14, %c0_108], %352 {strides = array<i32>} : memref<16x128xf32, #tpu.memory_space<vmem>>, vector<1x128xf32>,
    %354 = vector.extract_strided_slice %169 {offsets = [12, 0], sizes = [2, 32], strides = [1, 1]} : vector<14x32xf32> to vector<2x32xf32>
    %cst_109 = arith.constant dense<0.000000e+00> : vector<2x32xf32>
    %355 = tpu.matmul %326, %3, %cst_109 {dimension_numbers = #tpu.dot_dimension_numbers<[1], [0], [0], [1], [0, 0, 1, 1], [], []>} : vector<2x32xf32>, vector<32x32xf32>, vector<2x32xf32> -> vector<2x32xf32>
    %356 = arith.addf %354, %355 : vector<2x32xf32>
    %357 = math.tanh %356 : vector<2x32xf32>
    %cst_110 = arith.constant dense<0.000000e+00> : vector<2x32xf32>
    %358 = tpu.matmul %357, %5, %cst_110 {dimension_numbers = #tpu.dot_dimension_numbers<[1], [0], [0], [1], [0, 0, 1, 1], [], []>} : vector<2x32xf32>, vector<32x32xf32>, vector<2x32xf32> -> vector<2x32xf32>
    %359 = vector.broadcast %6 : vector<1x32xf32> to vector<2x32xf32>
    %360 = arith.addf %358, %359 : vector<2x32xf32>
    %cst_111 = arith.constant 0.000000e+00 : f32
    %361 = vector.broadcast %cst_111 : f32 to vector<2x32xf32>
    %362 = arith.maximumf %360, %361 : vector<2x32xf32>
    %363 = math.absf %360 : vector<2x32xf32>
    %cst_112 = arith.constant 0.000000e+00 : f32
    %364 = vector.broadcast %cst_112 : f32 to vector<2x32xf32>
    %365 = arith.subf %364, %363 : vector<2x32xf32>
    %366 = math.exp %365 : vector<2x32xf32>
    %367 = math.log1p %366 : vector<2x32xf32>
    %368 = arith.addf %362, %367 : vector<2x32xf32>
    %cst_113 = arith.constant dense<0.000000e+00> : vector<2x128xf32>
    %369 = tpu.matmul %368, %0, %cst_113 {dimension_numbers = #tpu.dot_dimension_numbers<[1], [0], [0], [1], [0, 0, 1, 1], [], []>} : vector<2x32xf32>, vector<32x128xf32>, vector<2x128xf32> -> vector<2x128xf32>
    %370 = vector.broadcast %1 : vector<1x128xf32> to vector<2x128xf32>
    %371 = arith.addf %369, %370 : vector<2x128xf32>
    %cst_114 = arith.constant 0.000000e+00 : f32
    %372 = vector.broadcast %cst_114 : f32 to vector<2x128xf32>
    %373 = arith.maximumf %371, %372 : vector<2x128xf32>
    %374 = math.absf %371 : vector<2x128xf32>
    %cst_115 = arith.constant 0.000000e+00 : f32
    %375 = vector.broadcast %cst_115 : f32 to vector<2x128xf32>
    %376 = arith.subf %375, %374 : vector<2x128xf32>
    %377 = math.exp %376 : vector<2x128xf32>
    %378 = math.log1p %377 : vector<2x128xf32>
    %379 = arith.addf %373, %378 : vector<2x128xf32>
    %380 = arith.select %9, %371, %379 : vector<2x128xi1>, vector<2x128xf32>
    %381 = vector.extract_strided_slice %380 {offsets = [0, 0], sizes = [1, 128], strides = [1, 1]} : vector<2x128xf32> to vector<1x128xf32>
    %c7 = arith.constant 7 : index
    %c0_116 = arith.constant 0 : index
    %382 = vector.load %arg4[%c7, %c0_116] : memref<16x128xf32, #tpu.memory_space<vmem>>, vector<1x128xf32>
    tpu.vector_store %arg4[%c7, %c0_116], %381 {strides = array<i32>} : memref<16x128xf32, #tpu.memory_space<vmem>>, vector<1x128xf32>,
    %383 = vector.extract_strided_slice %380 {offsets = [1, 0], sizes = [1, 128], strides = [1, 1]} : vector<2x128xf32> to vector<1x128xf32>
    %c15 = arith.constant 15 : index
    %c0_117 = arith.constant 0 : index
    %384 = vector.load %arg4[%c15, %c0_117] : memref<16x128xf32, #tpu.memory_space<vmem>>, vector<1x128xf32>
    tpu.vector_store %arg4[%c15, %c0_117], %383 {strides = array<i32>} : memref<16x128xf32, #tpu.memory_space<vmem>>, vector<1x128xf32>,
    return
  }
}

</mosaic_0001>

<bundles_post_ra>
// kernel: rnn_model_forward.1
= control target key start
LH: loop header
LB: loop body
LE: loop exit
PB: predicated region body
PF: predicated region fallthrough
CT: control target
= control target key end

     0   :  { %9 = vsyncpa [#allocation3], 0  ;;  %s1253_s18 = smov [#allocation2]   ;;  %s1254_s20 = smov 128   ;;  %s1592_s0 = inlined_call_operand.vmem [shape: f32[16,4], index: 0, kind: input, shape index: {}]   ;;  %s1593_s1 = inlined_call_operand.vmem [shape: f32[2,32], index: 1, kind: input, shape index: {}]   ;;  %s1594_s2 = inlined_call_operand.vmem [shape: f32[2,32], index: 2, kind: input, shape index: {}]   ;;  %s1595_s3 = inlined_call_operand.hbm [shape: f32[128,128], index: 3, kind: input, shape index: {}]   ;;  %s1596_s4 = inlined_call_operand.vmem [shape: f32[16,128], index: 4, kind: output, shape index: {}]  }
   0x1   :  { %s20_s17 = sshll.u32 %s1595_s3, 4  ;;  %s22_s19 = sshll.u32 %s1253_s18, 4  ;;  %s21_s17 = int_to_ptr.hbm [resolvable:$true] %s20_s17  ;;  %s23_s19 = int_to_ptr.vmem [resolvable:$true] %s22_s19 }
   0x2   :  { %s1255_s21 = smov 8  }
   0x3   :  { %28 = dma.hbm_to_vmem [thread:$0]  %s21_s17, 2048, %s23_s19, [#allocation3], %s1254_s20, %s1254_s20, %s1255_s21  }
   0x4   :  { %1251 = dma.done.wait [#allocation3], 2048  }
   0x5   :  { %1252 = vsyncadd [#allocation3], 4294965248  ;;  %v1285_v0 = vld [vmem:[#allocation2 + $0x70] sm:$0xff]  ;;  %v1287_v1 = vld [vmem:[#allocation2 + $0x68] sm:$0xff]  ;;  %vm1598_vm0 = vcmask 261120   ;;  %vm206_vm1 = vcmask 1043456   ;;  %v49_v15 = vlaneseq }
   0x6   :  { %70 = vmatpush.msra.mxu0 %v1285_v0  ;;  %133 = vmatpush.msra.mxu2 %v1285_v0  ;;  %v1291_v2 = vld [vmem:[#allocation2 + $0x60] sm:$0xff]  ;;  %v1295_v3 = vld [vmem:[#allocation2 + $0x58] sm:$0xff]  ;;  %v38_v6 = vld [vmem:[#allocation2 + $0x28] sm:$0xf]  ;;  %vm199_vm2 = vcmask 31744   ;;  %v1256_v63 = vmov 0.0  }
   0x7   :  { %v52_v4 = vld [vmem:[%s1593_s1] sm:$0x3]  ;;  %v198_v8 = vld [vmem:[%s1592_s0 + $0x8] sm:$0xff]  ;;  %v1319_v9 = vld [vmem:[#allocation2 + $0x18] sm:$0xff]  ;;  %v1346_v18 = vshrl.u32 %v49_v15, 7  ;;  %v1355_v31 = vand.u32 127, %v49_v15 }
   0x8   :  { %71 = vmatpush.msra.mxu0 %v1287_v1  ;;  %134 = vmatpush.msra.mxu2 %v1287_v1  ;;  %v117_v5 = vld [vmem:[%s1594_s2] sm:$0x3]  ;;  %v1321_v10 = vld [vmem:[#allocation2 + $0x10] sm:$0xff]  ;;  %v1325_v11 = vld [vmem:[#allocation2 + $0x8] sm:$0xff] }
   0x9   :  { %v197_v7 = vld [vmem:[%s1592_s0] sm:$0xff]  ;;  %109 = vmatpush.msra.mxu1 %v1319_v9  ;;  %171 = vmatpush.msra.mxu3 %v1319_v9  ;;  %v1342_v13 = vld [vmem:[#allocation2 + $0x78] ss:$0 sm:$0xff]  ;;  %v1105_v24 = vadd.s32 4294967294, %v1346_v18  ;;  %v1107_v26 = vadd.s32 4294967292, %v1346_v18  ;;  %v1109_v30 = vadd.s32 4294967290, %v1346_v18 }
   0xa   :  { %72 = vmatpush.msra.mxu0 %v1291_v2  ;;  %135 = vmatpush.msra.mxu2 %v1291_v2  ;;  %v1330_v12 = vld [vmem:[#allocation2] sm:$0xff]  ;;  %v242_v32 = vmul.u32 8, %v1346_v18  ;;  %vm248_vm3 = vcmp.ge.s32.totalorder %v1346_v18, 2  ;;  %vm250_vm4 = vcmp.lt.s32.totalorder %v1346_v18, 4  ;;  %vm238_vm5 = vcmp.lt.s32.totalorder %v1346_v18, 2 }
   0xb   :  { %110 = vmatpush.msra.mxu1 %v1321_v10  ;;  %172 = vmatpush.msra.mxu3 %v1321_v10  ;;  %v256_v28 = vmul.u32 8, %v1105_v24  ;;  %v272_v33 = vmul.u32 8, %v1107_v26  ;;  %v288_v39 = vmul.u32 8, %v1109_v30  ;;  %vm264_vm7 = vcmp.ge.s32.totalorder %v1346_v18, 4  ;;  %vm252_vm9 = vmand %vm248_vm3, %vm250_vm4  ;;  %v1415_v15 = vld [vmem:[#allocation2 + $0x50] ss:$0 sm:$0xff] }
   0xc   :  { %73 = vmatpush.msra.mxu0 %v1295_v3  ;;  %136 = vmatpush.msra.mxu2 %v1295_v3  ;;  %vm244_vm6 = vcmp.eq.s32.totalorder %v1355_v31, %v242_v32  ;;  %vm266_vm8 = vcmp.lt.s32.totalorder %v1346_v18, 6  ;;  %vm280_vm15 = vcmp.ge.s32.totalorder %v1346_v18, 6 }
   0xd   :  { %1098 = vmatmul.msk.f32.vlgmr.msra.gmra.mxu0 %vm1598_vm0, %v52_v4  ;;  %1100 = vmatmul.msk.f32.vlgmr.msra.gmra.mxu2 %vm1598_vm0, %v117_v5  ;;  %v258_v37 = vadd.s32 1, %v256_v28  ;;  %v274_v40 = vadd.s32 2, %v272_v33  ;;  %vm1367_vm11 = vmand %vm238_vm5, %vm244_vm6  ;;  %v290_v44 = vadd.s32 3, %v288_v39  ;;  %v1391_v5 = vld [vmem:[#allocation2 + $0x48] sm:$0xff] }
   0xe   :  { %1102 = vmatpush.msk.msrb.mxu0 %vm206_vm1, %v38_v6  ;;  %403 = vmatpush.msrb.mxu2 %v1285_v0  ;;  %vm268_vm12 = vmand %vm264_vm7, %vm266_vm8  ;;  %v1395_v6 = vld [vmem:[#allocation2 + $0x40] sm:$0xff] }
   0xf   :  { %111 = vmatpush.msra.mxu1 %v1325_v11  ;;  %173 = vmatpush.msra.mxu3 %v1325_v11  ;;  %vm260_vm10 = vcmp.eq.s32.totalorder %v1355_v31, %v258_v37  ;;  %vm276_vm13 = vcmp.eq.s32.totalorder %v1355_v31, %v274_v40 }
  0x10   :  { %404 = vmatpush.msrb.mxu2 %v1287_v1  ;;  %546 = vmatpush.msra.mxu0 %v1319_v9  ;;  %vm1372_vm14 = vmand %vm252_vm9, %vm260_vm10  ;;  %vm357_vm9 = vcmask 130048  }
  0x11   :  { %112 = vmatpush.msra.mxu1 %v1330_v12  ;;  %174 = vmatpush.msra.mxu3 %v1330_v12  ;;  %vm278_vm1 = vmand %vm268_vm12, %vm276_vm13 }
  0x12   :  { %405 = vmatpush.msrb.mxu2 %v1291_v2  ;;  %547 = vmatpush.msra.mxu0 %v1321_v10  ;;  %vm342_vm4 = vmor %vm1367_vm11, %vm1372_vm14  ;;  %vm1597_vm11 = vcmp.lt.s32.totalorder %v1355_v31, 4 }
  0x13   :  { %441 = vmatpush.msrb.mxu3 %v1319_v9  ;;  %vm344_vm6 = vmor %vm342_vm4, %vm278_vm1 }
  0x14   :  { %406 = vmatpush.msrb.mxu2 %v1295_v3  ;;  %548 = vmatpush.msra.mxu0 %v1325_v11 }
  0x15   :  { %1103 = vmatmul.msk.f32.vlgmr.msrb.gmra.mxu0 %vm199_vm2, %v197_v7  ;;  %442 = vmatpush.msrb.mxu3 %v1321_v10  ;;  %v1400_v7 = vld [vmem:[#allocation2 + $0x38] sm:$0xff] }
  0x16   :  { %549 = vmatpush.msra.mxu0 %v1330_v12  ;;  %479 = vmatpush.msra.mxu2 %v1391_v5 }
  0x17   :  { %443 = vmatpush.msrb.mxu3 %v1325_v11 }
  0x18   :  { %689 = vmatpush.msrb.mxu0 %v1391_v5  ;;  %480 = vmatpush.msra.mxu2 %v1395_v6 }
  0x19   :  { %444 = vmatpush.msrb.mxu3 %v1330_v12 }
  0x1a   :  { %690 = vmatpush.msrb.mxu0 %v1395_v6  ;;  %481 = vmatpush.msra.mxu2 %v1400_v7 }
  0x1c   :  { %691 = vmatpush.msrb.mxu0 %v1400_v7 }
  0x1d   :  { %1104 = vmatmul.msk.f32.gmra.mxu0 %vm199_vm2, %v198_v8  ;;  %vm292_vm2 = vcmp.eq.s32.totalorder %v1355_v31, %v290_v44  ;;  %v1405_v8 = vld [vmem:[#allocation2 + $0x30] sm:$0xff] }
  0x1e   :  { %vm294_vm5 = vmand %vm280_vm15, %vm292_vm2  ;;  %482 = vmatpush.msra.mxu2 %v1405_v8  ;;  %692 = vmatpush.msrb.mxu0 %v1405_v8 }
  0x1f   :  { %vm346_vm8 = vmor %vm344_vm6, %vm294_vm5 }
  0x20   :  { %v354_v4 = vsel %vm346_vm8, 1.0, %v1256_v63 }
  0x8a   :  { %v75_v14 = vpop.f32.mrf.mxu0 }
  0x8b   :  { %v76_v16 = vadd.f32 %v1342_v13, %v75_v14 }
  0x8d   :  { %v79_v17 = vand.u32 2147483647, %v76_v16  ;;  %v78_v53 = vmax.f32 %v76_v16, 0.0 }
  0x8f   :  { %v80_v19 = vsub.f32 0.0, %v79_v17 }
  0x90   :  { %v138_v20 = vpop.f32.mrf.mxu2 }
  0x91   :  { %v81_v21 = vmul.f32 1.442695, %v80_v19  ;;  %v1349_v22 = vadd.f32 %v1342_v13, %v138_v20  ;;  %v1420_v19 = vld [vmem:[#allocation2 + $0x20] ss:$0 sm:$0xff] }
  0x92   :  { %v227_v23 = vpop.f32.mrf.mxu0 }
  0x93   :  { %1145 = vpow2.f32 %v81_v21  ;;  %v142_v25 = vand.u32 2147483647, %v1349_v22  ;;  %v141_v59 = vmax.f32 %v1349_v22, 0.0 }
  0x95   :  { %v143_v27 = vsub.f32 0.0, %v142_v25 }
  0x97   :  { %v144_v29 = vmul.f32 1.442695, %v143_v27 }
  0x99   :  { %v1146_v34 = vpop.eup %1145  ;;  %1147 = vpow2.f32 %v144_v29 }
  0x9a   :  { %v230_v35 = vpop.f32.mrf.mxu0  ;;  %v83_v36 = vadd.f32 1.0, %v1146_v34  ;;  %v86_v38 = vmul.f32 -0.5, %v1146_v34  ;;  %v89_v45 = vand.u32 2147483647, %v1146_v34 }
  0x9b   :  { %378 = vmatpush.msrb.mxu1 %v230_v35 }
  0x9c   :  { %1149 = vlog2.f32 %v83_v36  ;;  %v87_v42 = vadd.f32 1.0, %v86_v38  ;;  %vm90_vm3 = vcmp.lt.f32.partialorder %v89_v45, 0.0004427343 }
  0x9d   :  { %379 = vmatpush.msrb.mxu1 %v227_v23 }
  0x9e   :  { %v88_v51 = vmul.f32 %v1146_v34, %v87_v42 }
  0x9f   :  { %v1148_v41 = vpop.eup %1147 }
  0xa0   :  { %v146_v46 = vadd.f32 1.0, %v1148_v41  ;;  %v149_v47 = vmul.f32 -0.5, %v1148_v41  ;;  %v152_v54 = vand.u32 2147483647, %v1148_v41 }
  0xa2   :  { %v1150_v49 = vpop.eup %1149  ;;  %1151 = vlog2.f32 %v146_v46  ;;  %v150_v52 = vadd.f32 1.0, %v149_v47  ;;  %vm153_vm7 = vcmp.lt.f32.partialorder %v152_v54, 0.0004427343  ;;  %v305_v46 = vadd.s32 4, %v242_v32 }
  0xa3   :  { %v85_v50 = vmul.f32 0.6931472, %v1150_v49 }
  0xa4   :  { %v151_v57 = vmul.f32 %v1148_v41, %v150_v52  ;;  %v235_v41 = vadd.s32 8, %v1346_v18  ;;  %vm307_vm15 = vcmp.eq.s32.totalorder %v1355_v31, %v305_v46 }
  0xa5   :  { %v91_v55 = vsel %vm90_vm3, %v88_v51, %v85_v50 }
  0xa6   :  { %v92_v56 = vadd.f32 %v91_v55, %v78_v53  ;;  %v1113_v42 = vadd.s32 4294967286, %v235_v41  ;;  %v1115_v43 = vadd.s32 4294967284, %v235_v41  ;;  %vm311_vm12 = vcmp.ge.s32.totalorder %v235_v41, 10 }
  0xa7   :  { %vm313_vm13 = vcmp.lt.s32.totalorder %v235_v41, 12  ;;  %vm299_vm14 = vcmp.lt.s32.totalorder %v235_v41, 10  ;;  %vm327_vm3 = vcmp.ge.s32.totalorder %v235_v41, 12  ;;  %vm329_vm5 = vcmp.lt.s32.totalorder %v235_v41, 14 }
  0xa8   :  { %v1152_v58 = vpop.eup %1151  ;;  %1099 = vmatmul.msk.f32.vlgmr.msra.gmra.mxu1 %vm1598_vm0, %v92_v56  ;;  %v319_v44 = vmul.u32 8, %v1113_v42  ;;  %v335_v45 = vmul.u32 8, %v1115_v43  ;;  %vm315_vm1 = vmand %vm311_vm12, %vm313_vm13 }
  0xa9   :  { %v148_v60 = vmul.f32 0.6931472, %v1152_v58  ;;  %584 = vmatpush.msra.mxu1 %v1391_v5  ;;  %vm309_vm4 = vmand %vm299_vm14, %vm307_vm15  ;;  %vm1607_vm15 = vcmp.lt.s32.totalorder %v1355_v31, 4 }
  0xaa   :  { %v321_v47 = vadd.s32 5, %v319_v44  ;;  %v337_v48 = vadd.s32 6, %v335_v45  ;;  %vm331_vm8 = vmand %vm327_vm3, %vm329_vm5 }
  0xab   :  { %v154_v61 = vsel %vm153_vm7, %v151_v57, %v148_v60  ;;  %585 = vmatpush.msra.mxu1 %v1395_v6 }
  0xac   :  { %v155_v62 = vadd.f32 %v154_v61, %v141_v59  ;;  %vm323_vm2 = vcmp.eq.s32.totalorder %v1355_v31, %v321_v47  ;;  %vm339_vm6 = vcmp.eq.s32.totalorder %v1355_v31, %v337_v48 }
  0xad   :  { %586 = vmatpush.msra.mxu1 %v1400_v7  ;;  %vm325_vm7 = vmand %vm315_vm1, %vm323_vm2 }
  0xae   :  { %1101 = vmatmul.msk.f32.vlgmr.msra.gmra.mxu3 %vm1598_vm0, %v155_v62 }
  0xaf   :  { %508 = vmatpush.msra.mxu3 %v1285_v0  ;;  %587 = vmatpush.msra.mxu1 %v1405_v8 }
  0xb0   :  { %1116 = vmatmul.msk.f32.vlgmr.msrb.gmra.mxu1 %vm357_vm9, %v354_v4 }
  0xb1   :  { %509 = vmatpush.msra.mxu3 %v1287_v1  ;;  %718 = vmatpush.msrb.mxu1 %v1285_v0 }
  0xb3   :  { %510 = vmatpush.msra.mxu3 %v1291_v2  ;;  %719 = vmatpush.msrb.mxu1 %v1287_v1 }
  0xb5   :  { %511 = vmatpush.msra.mxu3 %v1295_v3  ;;  %720 = vmatpush.msrb.mxu1 %v1291_v2 }
  0xb7   :  { %721 = vmatpush.msrb.mxu1 %v1295_v3 }
 0x125   :  { %v114_v14 = vpop.f32.mrf.mxu1 }
 0x126   :  { %v115_v38 = vadd.f32 %v1420_v19, %v114_v14 }
 0x12d   :  { %v381_v16 = vpop.f32.mrf.mxu1 }
 0x12e   :  { %v1418_v17 = vadd.f32 %v1415_v15, %v381_v16 }
 0x130   :  { %1153 = vtanh.f32 %v1418_v17 }
 0x131   :  { %v176_v20 = vpop.f32.mrf.mxu3 }
 0x132   :  { %v177_v21 = vadd.f32 %v1420_v19, %v176_v20 }
 0x134   :  { %v180_v22 = vand.u32 2147483647, %v177_v21  ;;  %v179_v35 = vmax.f32 %v177_v21, 0.0 }
 0x136   :  { %v1154_v23 = vpop.eup %1153  ;;  %v181_v24 = vsub.f32 0.0, %v180_v22 }
 0x137   :  { %1118 = vmatmul.msk.f32.vlgmr.msrb.gmra.mxu2 %vm1598_vm0, %v1154_v23 }
 0x138   :  { %v182_v25 = vmul.f32 1.442695, %v181_v24  ;;  %613 = vmatpush.msrb.mxu2 %v1285_v0 }
 0x13a   :  { %1155 = vpow2.f32 %v182_v25  ;;  %614 = vmatpush.msrb.mxu2 %v1287_v1 }
 0x13c   :  { %615 = vmatpush.msrb.mxu2 %v1291_v2 }
 0x13e   :  { %616 = vmatpush.msrb.mxu2 %v1295_v3 }
 0x13f   :  { %1120 = vmatmul.msk.f32.vlgmr.msra.gmra.mxu2 %vm1598_vm0, %v1154_v23 }
 0x140   :  { %v1156_v26 = vpop.eup %1155  ;;  %756 = vmatpush.msra.mxu2 %v1319_v9 }
 0x141   :  { %v184_v27 = vadd.f32 1.0, %v1156_v26  ;;  %v187_v28 = vmul.f32 -0.5, %v1156_v26  ;;  %v190_v30 = vand.u32 2147483647, %v1156_v26 }
 0x142   :  { %757 = vmatpush.msra.mxu2 %v1321_v10 }
 0x143   :  { %1157 = vlog2.f32 %v184_v27  ;;  %v188_v29 = vadd.f32 1.0, %v187_v28  ;;  %vm191_vm10 = vcmp.lt.f32.partialorder %v190_v30, 0.0004427343 }
 0x144   :  { %758 = vmatpush.msra.mxu2 %v1325_v11 }
 0x145   :  { %v189_v33 = vmul.f32 %v1156_v26, %v188_v29 }
 0x146   :  { %759 = vmatpush.msra.mxu2 %v1330_v12 }
 0x149   :  { %v1158_v34 = vpop.eup %1157 }
 0x14a   :  { %v186_v36 = vmul.f32 0.6931472, %v1158_v34 }
 0x14c   :  { %v192_v37 = vsel %vm191_vm10, %v189_v33, %v186_v36  ;;  %vm341_vm10 = vmand %vm331_vm8, %vm339_vm6 }
 0x14d   :  { %v193_v39 = vadd.f32 %v192_v37, %v179_v35 }
 0x14f   :  { %v194_v40 = vsel %vm1597_vm11, %v115_v38, %v193_v39  ;;  %vm351_vm11 = vmor %vm309_vm4, %vm325_vm7 }
 0x150   :  { %195 = vst [vmem:[%s1596_s4] sm:$0x1] %v194_v40  ;;  %vm353_vm0 = vmor %vm351_vm11, %vm341_vm10 }
 0x151   :  { %196 = vst [vmem:[%s1596_s4 + $0x7] sm:$0x2] %v194_v40  ;;  %v355_v18 = vsel %vm353_vm0, 1.0, %v1256_v63  ;;  %vm1603_vm0 = vcmask 261120   ;;  %vm1613_vm10 = vmmov %vm1607_vm15 }
 0x152   :  { %1117 = vmatmul.msk.f32.gmra.mxu1 %vm357_vm9, %v355_v18  ;;  %vm1604_vm11 = vmmov %vm1603_vm0 }
 0x153   :  { %vm1605_vm12 = vmmov %vm1603_vm0 }
 0x154   :  { %vm1606_vm13 = vmmov %vm1603_vm0 }
 0x155   :  { %vm1608_vm2 = vmmov %vm1603_vm0 }
 0x156   :  { %vm1609_vm3 = vmmov %vm1603_vm0 }
 0x157   :  { %vm1610_vm5 = vmmov %vm1603_vm0 }
 0x158   :  { %vm1611_vm6 = vmmov %vm1603_vm0 }
 0x159   :  { %vm1612_vm7 = vmmov %vm1603_vm0 }
 0x1ba   :  { %v408_v32 = vpop.f32.mrf.mxu2 }
 0x1bb   :  { %v409_v49 = vadd.f32 %v1342_v13, %v408_v32 }
 0x1bd   :  { %v412_v50 = vand.u32 2147483647, %v409_v49  ;;  %v411_v16 = vmax.f32 %v409_v49, 0.0 }
 0x1bf   :  { %v413_v51 = vsub.f32 0.0, %v412_v50 }
 0x1c1   :  { %v414_v52 = vmul.f32 1.442695, %v413_v51 }
 0x1c2   :  { %v484_v53 = vpop.f32.mrf.mxu2 }
 0x1c3   :  { %1159 = vpow2.f32 %v414_v52  ;;  %v488_v54 = vrot.slane %v484_v53, 6 }
 0x1c5   :  { %v490_v55 = vadd.f32 %v488_v54, %v1418_v17 }
 0x1c7   :  { %1161 = vtanh.f32 %v490_v55 }
 0x1c9   :  { %v1160_v56 = vpop.eup %1159 }
 0x1ca   :  { %v416_v57 = vadd.f32 1.0, %v1160_v56  ;;  %v419_v58 = vmul.f32 -0.5, %v1160_v56  ;;  %v422_v62 = vand.u32 2147483647, %v1160_v56 }
 0x1cc   :  { %1163 = vlog2.f32 %v416_v57  ;;  %v420_v61 = vadd.f32 1.0, %v419_v58  ;;  %vm423_vm9 = vcmp.lt.f32.partialorder %v422_v62, 0.0004427343 }
 0x1cd   :  { %v1162_v59 = vpop.eup %1161 }
 0x1ce   :  { %v493_v60 = vrot.slane %v1162_v59, 2  ;;  %v421_v14 = vmul.f32 %v1160_v56, %v420_v61 }
 0x1cf   :  { %v1469_v22 = vpop.f32.mrf.mxu1 }
 0x1d0   :  { %1123 = vmatmul.msk.f32.vlgmr.msra.gmra.mxu1 %vm1603_vm0, %v493_v60 }
 0x1d1   :  { %857 = vmatpush.msra.mxu1 %v1319_v9 }
 0x1d2   :  { %v1164_v63 = vpop.eup %1163 }
 0x1d3   :  { %v418_v4 = vmul.f32 0.6931472, %v1164_v63  ;;  %858 = vmatpush.msra.mxu1 %v1321_v10 }
 0x1d5   :  { %v424_v20 = vsel %vm423_vm9, %v421_v14, %v418_v4  ;;  %859 = vmatpush.msra.mxu1 %v1325_v11  ;;  %vm1614_vm9 = vmmov %vm1613_vm10 }
 0x1d6   :  { %v425_v21 = vadd.f32 %v424_v20, %v411_v16 }
 0x1d7   :  { %860 = vmatpush.msra.mxu1 %v1330_v12 }
 0x1d8   :  { %1119 = vmatmul.msk.f32.vlgmr.msrb.gmra.mxu3 %vm1604_vm11, %v425_v21  ;;  %vm1615_vm11 = vmmov %vm1608_vm2 }
 0x1d9   :  { %651 = vmatpush.msrb.mxu3 %v1319_v9 }
 0x1db   :  { %652 = vmatpush.msrb.mxu3 %v1321_v10 }
 0x1dd   :  { %653 = vmatpush.msrb.mxu3 %v1325_v11 }
 0x1df   :  { %654 = vmatpush.msrb.mxu3 %v1330_v12 }
 0x1e0   :  { %1121 = vmatmul.msk.f32.vlgmr.msra.gmra.mxu3 %vm1605_vm12, %v493_v60 }
 0x1e1   :  { %794 = vmatpush.msra.mxu3 %v1391_v5 }
 0x1e3   :  { %795 = vmatpush.msra.mxu3 %v1395_v6 }
 0x1e5   :  { %796 = vmatpush.msra.mxu3 %v1400_v7 }
 0x1e7   :  { %797 = vmatpush.msra.mxu3 %v1405_v8 }
 0x24d   :  { %v589_v23 = vpop.f32.mrf.mxu1 }
 0x24e   :  { %v593_v24 = vrot.slane %v589_v23, 4 }
 0x250   :  { %v595_v25 = vadd.f32 %v593_v24, %v1418_v17 }
 0x252   :  { %1165 = vtanh.f32 %v595_v25 }
 0x258   :  { %v1166_v26 = vpop.eup %1165 }
 0x259   :  { %v598_v27 = vrot.slane %v1166_v26, 4 }
 0x25b   :  { %v446_v28 = vpop.f32.mrf.mxu3  ;;  %1124 = vmatmul.msk.f32.vlgmr.msrb.gmra.mxu2 %vm1606_vm13, %v598_v27  ;;  %vm1616_vm13 = vmmov %vm1608_vm2 }
 0x25c   :  { %v447_v29 = vadd.f32 %v1420_v19, %v446_v28  ;;  %895 = vmatpush.msrb.mxu2 %v1391_v5 }
 0x25e   :  { %v450_v30 = vand.u32 2147483647, %v447_v29  ;;  %896 = vmatpush.msrb.mxu2 %v1395_v6  ;;  %v449_v49 = vmax.f32 %v447_v29, 0.0 }
 0x260   :  { %v451_v33 = vsub.f32 0.0, %v450_v30  ;;  %897 = vmatpush.msrb.mxu2 %v1400_v7 }
 0x262   :  { %v452_v34 = vmul.f32 1.442695, %v451_v33  ;;  %898 = vmatpush.msrb.mxu2 %v1405_v8 }
 0x263   :  { %v513_v35 = vpop.f32.mrf.mxu3 }
 0x264   :  { %1167 = vpow2.f32 %v452_v34  ;;  %v514_v36 = vadd.f32 %v1342_v13, %v513_v35 }
 0x266   :  { %v517_v37 = vand.u32 2147483647, %v514_v36  ;;  %v516_v58 = vmax.f32 %v514_v36, 0.0 }
 0x268   :  { %v518_v38 = vsub.f32 0.0, %v517_v37 }
 0x26a   :  { %v1168_v39 = vpop.eup %1167  ;;  %v519_v40 = vmul.f32 1.442695, %v518_v38 }
 0x26b   :  { %v454_v41 = vadd.f32 1.0, %v1168_v39  ;;  %v457_v42 = vmul.f32 -0.5, %v1168_v39  ;;  %v460_v44 = vand.u32 2147483647, %v1168_v39 }
 0x26c   :  { %1169 = vpow2.f32 %v519_v40 }
 0x26d   :  { %1171 = vlog2.f32 %v454_v41  ;;  %v458_v43 = vadd.f32 1.0, %v457_v42  ;;  %vm461_vm14 = vcmp.lt.f32.partialorder %v460_v44, 0.0004427343 }
 0x26f   :  { %v459_v18 = vmul.f32 %v1168_v39, %v458_v43 }
 0x272   :  { %v1170_v45 = vpop.eup %1169 }
 0x273   :  { %v1172_v46 = vpop.eup %1171  ;;  %v521_v47 = vadd.f32 1.0, %v1170_v45  ;;  %v524_v32 = vmul.f32 -0.5, %v1170_v45  ;;  %v527_v54 = vand.u32 2147483647, %v1170_v45 }
 0x274   :  { %v456_v48 = vmul.f32 0.6931472, %v1172_v46 }
 0x275   :  { %1173 = vlog2.f32 %v521_v47  ;;  %v525_v52 = vadd.f32 1.0, %v524_v32  ;;  %vm528_vm1 = vcmp.lt.f32.partialorder %v527_v54, 0.0004427343 }
 0x276   :  { %v462_v50 = vsel %vm461_vm14, %v459_v18, %v456_v48  ;;  %vm1617_vm14 = vmmov %vm1608_vm2 }
 0x277   :  { %v463_v51 = vadd.f32 %v462_v50, %v449_v49  ;;  %v526_v57 = vmul.f32 %v1170_v45, %v525_v52 }
 0x279   :  { %v464_v53 = vsel %vm1607_vm15, %v447_v29, %v463_v51 }
 0x27a   :  { %465 = vst [vmem:[%s1596_s4 + $0x1] sm:$0x1] %v464_v53 }
 0x27b   :  { %v1174_v55 = vpop.eup %1173  ;;  %466 = vst [vmem:[%s1596_s4 + $0x8] sm:$0x2] %v464_v53 }
 0x27c   :  { %v523_v56 = vmul.f32 0.6931472, %v1174_v55 }
 0x27e   :  { %v529_v59 = vsel %vm528_vm1, %v526_v57, %v523_v56  ;;  %v1527_v57 = vadd.f32 %v1415_v15, %v1469_v22  ;;  %vm1618_vm1 = vmmov %vm1608_vm2 }
 0x27f   :  { %v530_v60 = vadd.f32 %v529_v59, %v516_v58 }
 0x281   :  { %1122 = vmatmul.msk.f32.vlgmr.msra.gmra.mxu0 %vm1608_vm2, %v530_v60  ;;  %vm1619_vm2 = vmmov %vm1618_vm1 }
 0x282   :  { %819 = vmatpush.msra.mxu0 %v1285_v0 }
 0x284   :  { %820 = vmatpush.msra.mxu0 %v1287_v1 }
 0x286   :  { %821 = vmatpush.msra.mxu0 %v1291_v2 }
 0x288   :  { %822 = vmatpush.msra.mxu0 %v1295_v3 }
 0x289   :  { %1126 = vmatmul.msk.f32.vlgmr.msrb.gmra.mxu0 %vm1609_vm3, %v598_v27  ;;  %vm1620_vm3 = vmmov %vm1618_vm1 }
 0x28a   :  { %962 = vmatpush.msrb.mxu0 %v1319_v9 }
 0x28c   :  { %963 = vmatpush.msrb.mxu0 %v1321_v10 }
 0x28e   :  { %964 = vmatpush.msrb.mxu0 %v1325_v11 }
 0x290   :  { %965 = vmatpush.msrb.mxu0 %v1330_v12 }
 0x2de   :  { %v618_v61 = vpop.f32.mrf.mxu2 }
 0x2df   :  { %v619_v62 = vadd.f32 %v1342_v13, %v618_v61 }
 0x2e1   :  { %v622_v63 = vand.u32 2147483647, %v619_v62  ;;  %v621_v28 = vmax.f32 %v619_v62, 0.0 }
 0x2e3   :  { %v623_v4 = vsub.f32 0.0, %v622_v63 }
 0x2e5   :  { %v624_v14 = vmul.f32 1.442695, %v623_v4 }
 0x2e7   :  { %1175 = vpow2.f32 %v624_v14 }
 0x2ed   :  { %v1176_v16 = vpop.eup %1175 }
 0x2ee   :  { %v626_v20 = vadd.f32 1.0, %v1176_v16  ;;  %v629_v21 = vmul.f32 -0.5, %v1176_v16  ;;  %v632_v24 = vand.u32 2147483647, %v1176_v16 }
 0x2f0   :  { %1177 = vlog2.f32 %v626_v20  ;;  %v630_v23 = vadd.f32 1.0, %v629_v21  ;;  %vm633_vm4 = vcmp.lt.f32.partialorder %v632_v24, 0.0004427343 }
 0x2f2   :  { %v631_v27 = vmul.f32 %v1176_v16, %v630_v23 }
 0x2f6   :  { %v1178_v25 = vpop.eup %1177 }
 0x2f7   :  { %v628_v26 = vmul.f32 0.6931472, %v1178_v25 }
 0x2f9   :  { %v634_v29 = vsel %vm633_vm4, %v631_v27, %v628_v26 }
 0x2fa   :  { %v635_v30 = vadd.f32 %v634_v29, %v621_v28 }
 0x2fc   :  { %1125 = vmatmul.msk.f32.vlgmr.msrb.gmra.mxu3 %vm1610_vm5, %v635_v30  ;;  %vm1621_vm5 = vmmov %vm1614_vm9 }
 0x2fd   :  { %924 = vmatpush.msrb.mxu3 %v1285_v0 }
 0x2fe   :  { %v551_v33 = vpop.f32.mrf.mxu0 }
 0x2ff   :  { %v552_v34 = vadd.f32 %v1420_v19, %v551_v33  ;;  %925 = vmatpush.msrb.mxu3 %v1287_v1 }
 0x301   :  { %v555_v35 = vand.u32 2147483647, %v552_v34  ;;  %926 = vmatpush.msrb.mxu3 %v1291_v2  ;;  %v554_v32 = vmax.f32 %v552_v34, 0.0 }
 0x303   :  { %v556_v36 = vsub.f32 0.0, %v555_v35  ;;  %927 = vmatpush.msrb.mxu3 %v1295_v3 }
 0x305   :  { %v557_v37 = vmul.f32 1.442695, %v556_v36 }
 0x306   :  { %v694_v38 = vpop.f32.mrf.mxu0 }
 0x307   :  { %1179 = vpow2.f32 %v557_v37  ;;  %v698_v39 = vrot.slane %v694_v38, 2 }
 0x309   :  { %v700_v40 = vadd.f32 %v698_v39, %v1418_v17 }
 0x30b   :  { %1181 = vtanh.f32 %v700_v40 }
 0x30d   :  { %v1180_v41 = vpop.eup %1179 }
 0x30e   :  { %v559_v42 = vadd.f32 1.0, %v1180_v41  ;;  %v562_v43 = vmul.f32 -0.5, %v1180_v41  ;;  %v565_v47 = vand.u32 2147483647, %v1180_v41 }
 0x310   :  { %1183 = vlog2.f32 %v559_v42  ;;  %v563_v46 = vadd.f32 1.0, %v562_v43  ;;  %vm566_vm8 = vcmp.lt.f32.partialorder %v565_v47, 0.0004427343 }
 0x311   :  { %v1182_v44 = vpop.eup %1181 }
 0x312   :  { %v703_v45 = vrot.slane %v1182_v44, 6  ;;  %v564_v17 = vmul.f32 %v1180_v41, %v563_v46 }
 0x314   :  { %1127 = vmatmul.msk.f32.vlgmr.msrb.gmra.mxu1 %vm1611_vm6, %v703_v45  ;;  %1129 = vmatmul.msk.f32.vlgmr.msra.gmra.mxu3 %vm1612_vm7, %v703_v45  ;;  %vm1622_vm6 = vmmov %vm1618_vm1 }
 0x315   :  { %1000 = vmatpush.msrb.mxu1 %v1391_v5  ;;  %1067 = vmatpush.msra.mxu3 %v1319_v9 }
 0x316   :  { %v1184_v48 = vpop.eup %1183 }
 0x317   :  { %v561_v18 = vmul.f32 0.6931472, %v1184_v48  ;;  %1001 = vmatpush.msrb.mxu1 %v1395_v6  ;;  %1068 = vmatpush.msra.mxu3 %v1321_v10 }
 0x319   :  { %v567_v49 = vsel %vm566_vm8, %v564_v17, %v561_v18  ;;  %1002 = vmatpush.msrb.mxu1 %v1400_v7  ;;  %1069 = vmatpush.msra.mxu3 %v1325_v11  ;;  %vm1623_vm8 = vmmov %vm1621_vm5 }
 0x31a   :  { %v568_v50 = vadd.f32 %v567_v49, %v554_v32 }
 0x31b   :  { %1003 = vmatpush.msrb.mxu1 %v1405_v8  ;;  %1070 = vmatpush.msra.mxu3 %v1330_v12 }
 0x31c   :  { %v569_v9 = vsel %vm1613_vm10, %v552_v34, %v568_v50 }
 0x31d   :  { %570 = vst [vmem:[%s1596_s4 + $0x2] sm:$0x1] %v569_v9 }
 0x31e   :  { %571 = vst [vmem:[%s1596_s4 + $0x9] sm:$0x2] %v569_v9 }
 0x37f   :  { %v656_v10 = vpop.f32.mrf.mxu3 }
 0x380   :  { %v657_v5 = vadd.f32 %v1420_v19, %v656_v10 }
 0x382   :  { %v660_v11 = vand.u32 2147483647, %v657_v5  ;;  %v659_v14 = vmax.f32 %v657_v5, 0.0 }
 0x384   :  { %v661_v6 = vsub.f32 0.0, %v660_v11 }
 0x386   :  { %v662_v7 = vmul.f32 1.442695, %v661_v6 }
 0x388   :  { %1185 = vpow2.f32 %v662_v7 }
 0x38e   :  { %v1186_v8 = vpop.eup %1185 }
 0x38f   :  { %v664_v12 = vadd.f32 1.0, %v1186_v8  ;;  %v667_v51 = vmul.f32 -0.5, %v1186_v8  ;;  %v670_v56 = vand.u32 2147483647, %v1186_v8 }
 0x391   :  { %1187 = vlog2.f32 %v664_v12  ;;  %v723_v52 = vpop.f32.mrf.mxu1  ;;  %v668_v54 = vadd.f32 1.0, %v667_v51  ;;  %vm671_vm0 = vcmp.lt.f32.partialorder %v670_v56, 0.0004427343 }
 0x392   :  { %v724_v53 = vadd.f32 %v1342_v13, %v723_v52 }
 0x393   :  { %v669_v62 = vmul.f32 %v1186_v8, %v668_v54 }
 0x394   :  { %v727_v55 = vand.u32 2147483647, %v724_v53  ;;  %v726_v30 = vmax.f32 %v724_v53, 0.0 }
 0x396   :  { %v728_v58 = vsub.f32 0.0, %v727_v55 }
 0x397   :  { %v1188_v59 = vpop.eup %1187  ;;  %v799_v60 = vpop.f32.mrf.mxu3 }
 0x398   :  { %v666_v61 = vmul.f32 0.6931472, %v1188_v59  ;;  %v729_v63 = vmul.f32 1.442695, %v728_v58  ;;  %v802_v4 = vadd.f32 %v799_v60, %v1527_v57 }
 0x39a   :  { %v672_v16 = vsel %vm671_vm0, %v669_v62, %v666_v61  ;;  %1189 = vpow2.f32 %v729_v63  ;;  %vm1624_vm0 = vmmov %vm1618_vm1 }
 0x39b   :  { %v673_v20 = vadd.f32 %v672_v16, %v659_v14  ;;  %1191 = vtanh.f32 %v802_v4 }
 0x39d   :  { %v674_v21 = vsel %vm1614_vm9, %v657_v5, %v673_v20 }
 0x39e   :  { %675 = vst [vmem:[%s1596_s4 + $0x3] sm:$0x1] %v674_v21 }
 0x39f   :  { %676 = vst [vmem:[%s1596_s4 + $0xa] sm:$0x2] %v674_v21 }
 0x3a0   :  { %v1190_v15 = vpop.eup %1189 }
 0x3a1   :  { %v1192_v22 = vpop.eup %1191  ;;  %v731_v23 = vadd.f32 1.0, %v1190_v15  ;;  %v734_v24 = vmul.f32 -0.5, %v1190_v15  ;;  %v737_v26 = vand.u32 2147483647, %v1190_v15 }
 0x3a2   :  { %1130 = vmatmul.msk.f32.vlgmr.msra.gmra.mxu0 %vm1615_vm11, %v1192_v22  ;;  %vm1625_vm11 = vmmov %vm1624_vm0 }
 0x3a3   :  { %1193 = vlog2.f32 %v731_v23  ;;  %v735_v25 = vadd.f32 1.0, %v734_v24  ;;  %vm738_vm12 = vcmp.lt.f32.partialorder %v737_v26, 0.0004427343 }
 0x3a5   :  { %v736_v29 = vmul.f32 %v1190_v15, %v735_v25 }
 0x3a9   :  { %v1194_v27 = vpop.eup %1193 }
 0x3aa   :  { %v733_v28 = vmul.f32 0.6931472, %v1194_v27 }
 0x3ac   :  { %v739_v33 = vsel %vm738_vm12, %v736_v29, %v733_v28 }
 0x3ad   :  { %v740_v34 = vadd.f32 %v739_v33, %v726_v30 }
 0x3af   :  { %1128 = vmatmul.msk.f32.vlgmr.msra.gmra.mxu2 %vm1616_vm13, %v740_v34  ;;  %vm1626_vm13 = vmmov %vm1621_vm5 }
 0x3b0   :  { %1029 = vmatpush.msra.mxu2 %v1285_v0 }
 0x3b2   :  { %1030 = vmatpush.msra.mxu2 %v1287_v1 }
 0x3b4   :  { %1031 = vmatpush.msra.mxu2 %v1291_v2 }
 0x3b6   :  { %1032 = vmatpush.msra.mxu2 %v1295_v3 }
 0x3b7   :  { %1132 = vmatmul.msk.f32.vlgmr.msrb.gmra.mxu2 %vm1617_vm14, %v1192_v22 }
 0x41f   :  { %v824_v35 = vpop.f32.mrf.mxu0 }
 0x420   :  { %v825_v36 = vadd.f32 %v1342_v13, %v824_v35 }
 0x422   :  { %v828_v37 = vand.u32 2147483647, %v825_v36  ;;  %v827_v48 = vmax.f32 %v825_v36, 0.0 }
 0x424   :  { %v829_v38 = vsub.f32 0.0, %v828_v37 }
 0x426   :  { %v830_v39 = vmul.f32 1.442695, %v829_v38 }
 0x428   :  { %1195 = vpow2.f32 %v830_v39 }
 0x42e   :  { %v1196_v40 = vpop.eup %1195 }
 0x42f   :  { %v832_v41 = vadd.f32 1.0, %v1196_v40  ;;  %v835_v42 = vmul.f32 -0.5, %v1196_v40  ;;  %v838_v2 = vand.u32 2147483647, %v1196_v40 }
 0x431   :  { %1197 = vlog2.f32 %v832_v41  ;;  %v836_v43 = vadd.f32 1.0, %v835_v42  ;;  %vm839_vm15 = vcmp.lt.f32.partialorder %v838_v2, 0.0004427343 }
 0x432   :  { %v761_v0 = vpop.f32.mrf.mxu2 }
 0x433   :  { %v762_v1 = vadd.f32 %v1420_v19, %v761_v0  ;;  %v837_v47 = vmul.f32 %v1196_v40, %v836_v43 }
 0x435   :  { %v765_v44 = vand.u32 2147483647, %v762_v1  ;;  %v764_v54 = vmax.f32 %v762_v1, 0.0 }
 0x437   :  { %v1198_v3 = vpop.eup %1197  ;;  %v766_v45 = vsub.f32 0.0, %v765_v44 }
 0x438   :  { %v834_v46 = vmul.f32 0.6931472, %v1198_v3 }
 0x439   :  { %v767_v18 = vmul.f32 1.442695, %v766_v45 }
 0x43a   :  { %v840_v17 = vsel %vm839_vm15, %v837_v47, %v834_v46  ;;  %v900_v32 = vpop.f32.mrf.mxu2  ;;  %vm1627_vm15 = vmmov %vm1621_vm5 }
 0x43b   :  { %v841_v49 = vadd.f32 %v840_v17, %v827_v48  ;;  %1199 = vpow2.f32 %v767_v18  ;;  %v904_v50 = vrot.slane %v900_v32, 6 }
 0x43d   :  { %v906_v9 = vadd.f32 %v904_v50, %v1527_v57  ;;  %1131 = vmatmul.msk.f32.vlgmr.msra.gmra.mxu1 %vm1618_vm1, %v841_v49 }
 0x43f   :  { %1201 = vtanh.f32 %v906_v9 }
 0x441   :  { %v1200_v10 = vpop.eup %1199 }
 0x442   :  { %v769_v5 = vadd.f32 1.0, %v1200_v10  ;;  %v772_v11 = vmul.f32 -0.5, %v1200_v10  ;;  %v775_v12 = vand.u32 2147483647, %v1200_v10 }
 0x444   :  { %1203 = vlog2.f32 %v769_v5  ;;  %v773_v8 = vadd.f32 1.0, %v772_v11  ;;  %vm776_vm4 = vcmp.lt.f32.partialorder %v775_v12, 0.0004427343 }
 0x445   :  { %v1202_v6 = vpop.eup %1201 }
 0x446   :  { %v909_v7 = vrot.slane %v1202_v6, 2  ;;  %v774_v53 = vmul.f32 %v1200_v10, %v773_v8 }
 0x448   :  { %1133 = vmatmul.msk.f32.vlgmr.msrb.gmra.mxu3 %vm1619_vm2, %v909_v7  ;;  %1135 = vmatmul.msk.f32.vlgmr.msrb.gmra.mxu1 %vm1620_vm3, %v909_v7 }
 0x44a   :  { %v1204_v51 = vpop.eup %1203 }
 0x44b   :  { %v771_v52 = vmul.f32 0.6931472, %v1204_v51 }
 0x44d   :  { %v777_v55 = vsel %vm776_vm4, %v774_v53, %v771_v52 }
 0x44e   :  { %v778_v56 = vadd.f32 %v777_v55, %v764_v54 }
 0x450   :  { %v779_v58 = vsel %vm1621_vm5, %v762_v1, %v778_v56 }
 0x451   :  { %780 = vst [vmem:[%s1596_s4 + $0x4] sm:$0x1] %v779_v58 }
 0x452   :  { %781 = vst [vmem:[%s1596_s4 + $0xb] sm:$0x2] %v779_v58 }
 0x4ba   :  { %v862_v59 = vpop.f32.mrf.mxu1 }
 0x4bb   :  { %v863_v60 = vadd.f32 %v1420_v19, %v862_v59 }
 0x4bd   :  { %v866_v61 = vand.u32 2147483647, %v863_v60 }
 0x4bf   :  { %v867_v62 = vsub.f32 0.0, %v866_v61 }
 0x4c1   :  { %v868_v63 = vmul.f32 1.442695, %v867_v62 }
 0x4c3   :  { %1205 = vpow2.f32 %v868_v63 }
 0x4c5   :  { %v1005_v4 = vpop.f32.mrf.mxu1 }
 0x4c6   :  { %v1009_v14 = vrot.slane %v1005_v4, 4 }
 0x4c8   :  { %v1011_v16 = vadd.f32 %v1009_v14, %v1527_v57  ;;  %v865_v57 = vmax.f32 %v863_v60, 0.0 }
 0x4c9   :  { %v1206_v20 = vpop.eup %1205 }
 0x4ca   :  { %v870_v21 = vadd.f32 1.0, %v1206_v20  ;;  %1207 = vtanh.f32 %v1011_v16  ;;  %v873_v15 = vmul.f32 -0.5, %v1206_v20  ;;  %v876_v27 = vand.u32 2147483647, %v1206_v20 }
 0x4cb   :  { %v929_v22 = vpop.f32.mrf.mxu3 }
 0x4cc   :  { %1209 = vlog2.f32 %v870_v21  ;;  %v930_v23 = vadd.f32 %v1342_v13, %v929_v22  ;;  %v874_v25 = vadd.f32 1.0, %v873_v15  ;;  %vm877_vm7 = vcmp.lt.f32.partialorder %v876_v27, 0.0004427343 }
 0x4ce   :  { %v933_v24 = vand.u32 2147483647, %v930_v23  ;;  %v875_v35 = vmul.f32 %v1206_v20, %v874_v25  ;;  %v932_v44 = vmax.f32 %v930_v23, 0.0 }
 0x4d0   :  { %v1208_v26 = vpop.eup %1207  ;;  %v934_v28 = vsub.f32 0.0, %v933_v24 }
 0x4d1   :  { %v1014_v29 = vrot.slane %v1208_v26, 4 }
 0x4d2   :  { %v1210_v30 = vpop.eup %1209  ;;  %v935_v33 = vmul.f32 1.442695, %v934_v28 }
 0x4d3   :  { %v872_v34 = vmul.f32 0.6931472, %v1210_v30  ;;  %1136 = vmatmul.msk.f32.vlgmr.msra.gmra.mxu2 %vm1622_vm6, %v1014_v29 }
 0x4d4   :  { %1211 = vpow2.f32 %v935_v33 }
 0x4d5   :  { %v878_v36 = vsel %vm877_vm7, %v875_v35, %v872_v34 }
 0x4d6   :  { %v879_v37 = vadd.f32 %v878_v36, %v865_v57 }
 0x4d8   :  { %v880_v38 = vsel %vm1623_vm8, %v863_v60, %v879_v37 }
 0x4d9   :  { %881 = vst [vmem:[%s1596_s4 + $0x5] sm:$0x1] %v880_v38 }
 0x4da   :  { %v1212_v39 = vpop.eup %1211  ;;  %882 = vst [vmem:[%s1596_s4 + $0xc] sm:$0x2] %v880_v38 }
 0x4db   :  { %v937_v40 = vadd.f32 1.0, %v1212_v39  ;;  %v940_v41 = vmul.f32 -0.5, %v1212_v39  ;;  %v943_v0 = vand.u32 2147483647, %v1212_v39 }
 0x4dd   :  { %1213 = vlog2.f32 %v937_v40  ;;  %v941_v42 = vadd.f32 1.0, %v940_v41  ;;  %vm944_vm10 = vcmp.lt.f32.partialorder %v943_v0, 0.0004427343 }
 0x4df   :  { %v942_v2 = vmul.f32 %v1212_v39, %v941_v42 }
 0x4e3   :  { %v1214_v1 = vpop.eup %1213 }
 0x4e4   :  { %v939_v43 = vmul.f32 0.6931472, %v1214_v1 }
 0x4e6   :  { %v945_v3 = vsel %vm944_vm10, %v942_v2, %v939_v43 }
 0x4e7   :  { %v946_v45 = vadd.f32 %v945_v3, %v932_v44 }
 0x4e9   :  { %1134 = vmatmul.msk.f32.vlgmr.msrb.gmra.mxu0 %vm1624_vm0, %v946_v45 }
 0x556   :  { %v1034_v46 = vpop.f32.mrf.mxu2 }
 0x557   :  { %v1035_v47 = vadd.f32 %v1342_v13, %v1034_v46 }
 0x559   :  { %v1038_v48 = vand.u32 2147483647, %v1035_v47  ;;  %v1037_v13 = vmax.f32 %v1035_v47, 0.0 }
 0x55b   :  { %v1039_v18 = vsub.f32 0.0, %v1038_v48 }
 0x55d   :  { %v1040_v17 = vmul.f32 1.442695, %v1039_v18 }
 0x55f   :  { %1215 = vpow2.f32 %v1040_v17 }
 0x565   :  { %v1216_v32 = vpop.eup %1215 }
 0x566   :  { %v1042_v49 = vadd.f32 1.0, %v1216_v32  ;;  %v967_v50 = vpop.f32.mrf.mxu0  ;;  %v1045_v9 = vmul.f32 -0.5, %v1216_v32  ;;  %v1048_v7 = vand.u32 2147483647, %v1216_v32 }
 0x567   :  { %v968_v10 = vadd.f32 %v1420_v19, %v967_v50 }
 0x568   :  { %1217 = vlog2.f32 %v1042_v49  ;;  %v1046_v11 = vadd.f32 1.0, %v1045_v9  ;;  %vm1049_vm9 = vcmp.lt.f32.partialorder %v1048_v7, 0.0004427343 }
 0x569   :  { %v971_v5 = vand.u32 2147483647, %v968_v10  ;;  %v970_v4 = vmax.f32 %v968_v10, 0.0 }
 0x56a   :  { %v1047_v52 = vmul.f32 %v1216_v32, %v1046_v11 }
 0x56b   :  { %v972_v6 = vsub.f32 0.0, %v971_v5 }
 0x56d   :  { %v973_v8 = vmul.f32 1.442695, %v972_v6 }
 0x56e   :  { %v1218_v12 = vpop.eup %1217 }
 0x56f   :  { %v1044_v51 = vmul.f32 0.6931472, %v1218_v12  ;;  %1219 = vpow2.f32 %v973_v8 }
 0x571   :  { %v1050_v53 = vsel %vm1049_vm9, %v1047_v52, %v1044_v51 }
 0x572   :  { %v1051_v54 = vadd.f32 %v1050_v53, %v1037_v13 }
 0x574   :  { %1137 = vmatmul.msk.f32.vlgmr.msra.gmra.mxu3 %vm1625_vm11, %v1051_v54 }
 0x575   :  { %v1220_v55 = vpop.eup %1219 }
 0x576   :  { %v975_v56 = vadd.f32 1.0, %v1220_v55  ;;  %v978_v58 = vmul.f32 -0.5, %v1220_v55  ;;  %v981_v60 = vand.u32 2147483647, %v1220_v55 }
 0x578   :  { %1221 = vlog2.f32 %v975_v56  ;;  %v979_v59 = vadd.f32 1.0, %v978_v58  ;;  %vm982_vm12 = vcmp.lt.f32.partialorder %v981_v60, 0.0004427343 }
 0x57a   :  { %v980_v63 = vmul.f32 %v1220_v55, %v979_v59 }
 0x57e   :  { %v1222_v61 = vpop.eup %1221 }
 0x57f   :  { %v977_v62 = vmul.f32 0.6931472, %v1222_v61 }
 0x581   :  { %v983_v14 = vsel %vm982_vm12, %v980_v63, %v977_v62 }
 0x582   :  { %v984_v16 = vadd.f32 %v983_v14, %v970_v4 }
 0x584   :  { %v985_v20 = vsel %vm1626_vm13, %v968_v10, %v984_v16 }
 0x585   :  { %986 = vst [vmem:[%s1596_s4 + $0x6] sm:$0x1] %v985_v20 }
 0x586   :  { %987 = vst [vmem:[%s1596_s4 + $0xd] sm:$0x2] %v985_v20 }
 0x5f7   :  { %v1072_v21 = vpop.f32.mrf.mxu3 }
 0x5f8   :  { %v1073_v15 = vadd.f32 %v1420_v19, %v1072_v21 }
 0x5fa   :  { %v1076_v22 = vand.u32 2147483647, %v1073_v15  ;;  %v1075_v35 = vmax.f32 %v1073_v15, 0.0 }
 0x5fc   :  { %v1077_v23 = vsub.f32 0.0, %v1076_v22 }
 0x5fe   :  { %v1078_v24 = vmul.f32 1.442695, %v1077_v23 }
 0x600   :  { %1223 = vpow2.f32 %v1078_v24 }
 0x606   :  { %v1224_v25 = vpop.eup %1223 }
 0x607   :  { %v1080_v26 = vadd.f32 1.0, %v1224_v25  ;;  %v1083_v27 = vmul.f32 -0.5, %v1224_v25  ;;  %v1086_v29 = vand.u32 2147483647, %v1224_v25 }
 0x609   :  { %1225 = vlog2.f32 %v1080_v26  ;;  %v1084_v28 = vadd.f32 1.0, %v1083_v27  ;;  %vm1087_vm14 = vcmp.lt.f32.partialorder %v1086_v29, 0.0004427343 }
 0x60b   :  { %v1085_v34 = vmul.f32 %v1224_v25, %v1084_v28 }
 0x60f   :  { %v1226_v30 = vpop.eup %1225 }
 0x610   :  { %v1082_v33 = vmul.f32 0.6931472, %v1226_v30 }
 0x612   :  { %v1088_v57 = vsel %vm1087_vm14, %v1085_v34, %v1082_v33 }
 0x613   :  { %v1089_v36 = vadd.f32 %v1088_v57, %v1075_v35 }
 0x615   :  { %v1090_v19 = vsel %vm1627_vm15, %v1073_v15, %v1089_v36 }
 0x616   :  { %1091 = vst [vmem:[%s1596_s4 + $0x7] sm:$0x1] %v1090_v19 }
 0x617   :  { %1092 = vst [vmem:[%s1596_s4 + $0xe] sm:$0x2] %v1090_v19 }
 0x618   :  { %1097 = vsyncpa [#allocation3], 1 }

</bundles_post_ra>
